<compile_context>
chip_gen: v6e
topology: v6e:2x2x1
jax: 0.10.0
libtpu: 0.0.40
codegen_flags: <defaults>
</compile_context>

<pallas_src>
import functools

import jax
import jax.numpy as jnp
from jax.experimental import pallas as pl
from jax.experimental.pallas import tpu as pltpu

SUBLANE = 8  # f32 sublane tile height


# --------------------------- Pallas kernel -----------------------------------
def _gru_decoder_kernel(num_layers, T, B, H, x_ref, *refs):
    """Wavefront multi-layer GRU + FC head.

    refs = [w_ih_0, b_x_0, w_hh_0, b_h_0, ..., w_fc, b_fc, out_ref, hseq].
    `B` here is the sublane-padded batch (multiple of 8).
    """
    # Loop-invariant weights read ONCE (outside the unrolled time loop) so the
    # scheduler sees identical RHS operands across all chained dots.
    w_ih = [refs[4 * l][...] for l in range(num_layers)]       # (D_l, 3H)
    b_x = [refs[4 * l + 1][...] for l in range(num_layers)]    # (1, 3H)
    w_hh = [refs[4 * l + 2][...] for l in range(num_layers)]   # (H, 3H)
    b_h = [refs[4 * l + 3][...] for l in range(num_layers)]    # (1, 3H)
    w_fc = refs[4 * num_layers][...]                           # (H, V)
    b_fc = refs[4 * num_layers + 1][...]                       # (1, V)
    out_ref = refs[4 * num_layers + 2]                         # (T*B, V)
    hseq = refs[4 * num_layers + 3]                            # (T*B, H) scratch

    # Hoisted input projection for layer 0 over all timesteps at once: a single
    # (T*B, D) x (D, 3H) matmul, completely off the serial recurrence chain.
    gx0 = jnp.dot(x_ref[...], w_ih[0], preferred_element_type=jnp.float32) + b_x[0]

    h = [None] * num_layers

    for t in range(T):                         # fully unrolled (T static)
        # Wavefront over layers: layer l's step t is emitted right after layer
        # l-1's step t, so it can overlap layer l-1's step t+1 on the MXU.
        for l in range(num_layers):
            if l == 0:
                gx_t = gx0[t * B:(t + 1) * B, :]        # (B, 3H), static slice
            else:
                # Per-step input projection for stacked layers: depends on
                # h[l-1]_t, not on this layer's own recurrence.
                gx_t = jnp.dot(h[l - 1], w_ih[l],
                               preferred_element_type=jnp.float32) + b_x[l]
            if t == 0:
                gh = b_h[l]       # h == 0: recurrent dot degenerates to bias
            else:
                gh = jnp.dot(h[l], w_hh[l],
                             preferred_element_type=jnp.float32) + b_h[l]
            # r and z share one fused add + one sigmoid over 2H lanes.
            rz = jax.nn.sigmoid(gx_t[:, 0:2 * H] + gh[:, 0:2 * H])
            r = rz[:, 0:H]
            z = rz[:, H:2 * H]
            n = jnp.tanh(gx_t[:, 2 * H:3 * H] + r * gh[:, 2 * H:3 * H])
            if t == 0:
                h[l] = (1.0 - z) * n                    # z*h term vanishes
            else:
                h[l] = n + z * (h[l] - n)               # == (1-z)*n + z*h
        # Only the last layer feeds the FC head; aligned full-tile store
        # (B is a multiple of the 8-row sublane tile, t*B is static).
        hseq[pl.ds(t * B, B), :] = h[num_layers - 1]

    # FC head: one (T*B, H) x (H, V) matmul + one store.
    out_ref[...] = jnp.dot(hseq[...], w_fc,
                           preferred_element_type=jnp.float32) + b_fc


# --------------------------- glue / wrapper -----------------------------------
def _build_inputs(params, latent_vec, enthalpy, inp_tokens):
    """Embedding lookup + teacher-forcing shift + concat (plain JAX glue).
    Returns X of shape (B, T, latent_dim + embed_dim + 1)."""
    B, T = inp_tokens.shape
    E = params["embed"].shape[1]
    inp_embed = jnp.take(params["embed"], inp_tokens, axis=0)            # (B,T,E)
    start = jnp.broadcast_to(params["embed"][0][None, None, :], (B, 1, E))
    shifted = jnp.concatenate([start, inp_embed[:, :-1, :]], axis=1)     # (B,T,E)
    lat = jnp.broadcast_to(latent_vec[:, None, :], (B, T, latent_vec.shape[-1]))
    enth = jnp.broadcast_to(enthalpy[:, None, None].astype(jnp.float32), (B, T, 1))
    return jnp.concatenate([lat, shifted, enth], axis=-1).astype(jnp.float32)


def _fuse_gru_params(params, num_hidden, hidden_dim):
    """Fuse per-gate weights along the lane axis: W -> (D, 3H), b -> (1, 3H)."""
    H = hidden_dim
    fused = []
    for l in range(num_hidden):
        w_ih = params[f"w_ih_{l}"]              # (3, D, H)
        w_hh = params[f"w_hh_{l}"]              # (3, H, H)
        b_ih = params[f"b_ih_{l}"]              # (3, 1, H)
        b_hh = params[f"b_hh_{l}"]              # (3, 1, H)
        D = w_ih.shape[1]
        w_ih_f = jnp.transpose(w_ih, (1, 0, 2)).reshape(D, 3 * H)
        w_hh_f = jnp.transpose(w_hh, (1, 0, 2)).reshape(H, 3 * H)
        # r/z gates: input + hidden biases commute past sigmoid -> pre-sum.
        # n gate: b_in rides with the input projection; b_hn must stay with the
        # hidden projection because it is scaled by r.
        b_x_f = jnp.concatenate([b_ih[0] + b_hh[0], b_ih[1] + b_hh[1], b_ih[2]], axis=1)
        zero = jnp.zeros_like(b_hh[0])
        b_h_f = jnp.concatenate([zero, zero, b_hh[2]], axis=1)
        fused += [w_ih_f, b_x_f, w_hh_f, b_h_f]
    return fused


def cond_decoder_forward(params, latent_vec, enthalpy, inp_tokens, *,
                         hidden_dim, num_hidden, num_vocabs):
    X = _build_inputs(params, latent_vec, enthalpy, inp_tokens)          # (B,T,D)
    B, T, D = X.shape

    # Pad batch to the sublane width so every per-timestep block is one aligned
    # full sublane tile (no masked sub-tile loads/stores on the serial chain).
    Bp = max(SUBLANE, ((B + SUBLANE - 1) // SUBLANE) * SUBLANE)
    if Bp != B:
        X = jnp.pad(X, ((0, Bp - B), (0, 0), (0, 0)))
    Xt = jnp.transpose(X, (1, 0, 2)).reshape(T * Bp, D)                  # (T*Bp,D)

    args = [Xt] + _fuse_gru_params(params, num_hidden, hidden_dim)
    args += [params["w_fc"], params["b_fc"]]

    in_specs = [pl.BlockSpec(a.shape, lambda i, n=a.ndim: (0,) * n) for a in args]

    # grid=(1,): the T recurrence is serial and latency-bound; no batch
    # sharding across cores (zero win at these sizes, adds hand-off overhead).
    out_flat = pl.pallas_call(
        functools.partial(_gru_decoder_kernel, num_hidden, T, Bp, hidden_dim),
        grid=(1,),
        in_specs=in_specs,
        out_specs=pl.BlockSpec((T * Bp, num_vocabs), lambda i: (0, 0)),
        out_shape=jax.ShapeDtypeStruct((T * Bp, num_vocabs), jnp.float32),
        scratch_shapes=[pltpu.VMEM((T * Bp, hidden_dim), jnp.float32)],
        compiler_params=pltpu.CompilerParams(dimension_semantics=("arbitrary",)),
    )(*args)

    # Drop the padded batch rows before returning.
    out = out_flat.reshape(T, Bp, num_vocabs)[:, :B, :]
    return jnp.transpose(out, (1, 0, 2))                                 # (B,T,V)


# --------------------------- pure-JAX reference --------------------------------
def ref_forward(params, latent_vec, enthalpy, inp_tokens, *, hidden_dim, num_hidden):
    X = _build_inputs(params, latent_vec, enthalpy, inp_tokens)          # (B,T,D)
    B, T, _ = X.shape
    inp = X
    for l in range(num_hidden):
        w_ih, w_hh = params[f"w_ih_{l}"], params[f"w_hh_{l}"]
        b_ih, b_hh = params[f"b_ih_{l}"], params[f"b_hh_{l}"]
        h = jnp.zeros((B, hidden_dim), jnp.float32)
        outs = []
        for t in range(T):
            x_t = inp[:, t, :]
            r = jax.nn.sigmoid(x_t @ w_ih[0] + b_ih[0] + h @ w_hh[0] + b_hh[0])
            z = jax.nn.sigmoid(x_t @ w_ih[1] + b_ih[1] + h @ w_hh[1] + b_hh[1])
            n = jnp.tanh(x_t @ w_ih[2] + b_ih[2] + r * (h @ w_hh[2] + b_hh[2]))
            h = (1.0 - z) * n + z * h
            outs.append(h)
        inp = jnp.stack(outs, axis=1)
    return inp @ params["w_fc"] + params["b_fc"]


# --------------------------- parameter init ------------------------------------
def init_params(key, *, num_vocabs, embed_dim, latent_dim, con_dims,
                hidden_dim, num_hidden):
    keys = iter(jax.random.split(key, 3 + 4 * num_hidden))
    p = {"embed": jax.random.normal(next(keys), (num_vocabs, embed_dim), jnp.float32)}
    s = 1.0 / (hidden_dim ** 0.5)
    d_in = latent_dim + embed_dim + con_dims
    for l in range(num_hidden):
        d_l = d_in if l == 0 else hidden_dim
        p[f"w_ih_{l}"] = jax.random.uniform(next(keys), (3, d_l, hidden_dim),
                                            jnp.float32, -s, s)
        p[f"w_hh_{l}"] = jax.random.uniform(next(keys), (3, hidden_dim, hidden_dim),
                                            jnp.float32, -s, s)
        p[f"b_ih_{l}"] = jax.random.uniform(next(keys), (3, 1, hidden_dim),
                                            jnp.float32, -s, s)
        p[f"b_hh_{l}"] = jax.random.uniform(next(keys), (3, 1, hidden_dim),
                                            jnp.float32, -s, s)
    p["w_fc"] = jax.random.uniform(next(keys), (hidden_dim, num_vocabs),
                                   jnp.float32, -s, s)
    p["b_fc"] = jax.random.uniform(next(keys), (1, num_vocabs), jnp.float32, -s, s)
    return p


if __name__ == "__main__":
    # small shapes consistent with the module:
    # maxLength=8, num_vocabs=16, con_dims=1, latent_dim=8, hidden_dim=32,
    # num_hidden=2, embed_dim=32, batch=2
    B, T, V, E, L, C, H, NL = 2, 8, 16, 32, 8, 1, 32, 2

    key = jax.random.PRNGKey(0)
    kp, kl, ke, ki = jax.random.split(key, 4)
    params = init_params(kp, num_vocabs=V, embed_dim=E, latent_dim=L,
                         con_dims=C, hidden_dim=H, num_hidden=NL)
    latent_vec = jax.random.normal(kl, (B, L), jnp.float32)
    enthalpy = jax.random.normal(ke, (B,), jnp.float32)
    inp_tokens = jax.random.randint(ki, (B, T), 0, V)

    logits = cond_decoder_forward(params, latent_vec, enthalpy, inp_tokens,
                                  hidden_dim=H, num_hidden=NL, num_vocabs=V)
    logits = jax.block_until_ready(logits)

    ref = ref_forward(params, latent_vec, enthalpy, inp_tokens,
                      hidden_dim=H, num_hidden=NL)
    assert logits.shape == (B, T, V)
    err = float(jnp.max(jnp.abs(logits - ref)))
    assert err < 1e-2, f"max abs error {err}"
    print("KERNEL_OK")
</pallas_src>

<mosaic_0001>
module attributes {stable_mosaic.version = 11 : i64} {
  func.func @_gru_decoder_kernel(%arg0: i32, %arg1: memref<64x41xf32, #tpu.memory_space<vmem>>, %arg2: memref<41x96xf32, #tpu.memory_space<vmem>>, %arg3: memref<1x96xf32, #tpu.memory_space<vmem>>, %arg4: memref<32x96xf32, #tpu.memory_space<vmem>>, %arg5: memref<1x96xf32, #tpu.memory_space<vmem>>, %arg6: memref<32x96xf32, #tpu.memory_space<vmem>>, %arg7: memref<1x96xf32, #tpu.memory_space<vmem>>, %arg8: memref<32x96xf32, #tpu.memory_space<vmem>>, %arg9: memref<1x96xf32, #tpu.memory_space<vmem>>, %arg10: memref<32x16xf32, #tpu.memory_space<vmem>>, %arg11: memref<1x16xf32, #tpu.memory_space<vmem>>, %arg12: memref<64x16xf32, #tpu.memory_space<vmem>>, %arg13: memref<64x32xf32, #tpu.memory_space<vmem>>) attributes {dimension_semantics = [#tpu.dimension_semantics<arbitrary>], iteration_bounds = array<i64: 1>, scalar_prefetch = 0 : i64, scratch_operands = 1 : i64, tpu.core_type = #tpu.core_type<tc>, window_params = [{pipeline_mode = #tpu.pipeline_mode<synchronous>, transform_indices = @transform_0, window_bounds = array<i64: 64, 41>}, {pipeline_mode = #tpu.pipeline_mode<synchronous>, transform_indices = @transform_1, window_bounds = array<i64: 41, 96>}, {pipeline_mode = #tpu.pipeline_mode<synchronous>, transform_indices = @transform_2, window_bounds = array<i64: 1, 96>}, {pipeline_mode = #tpu.pipeline_mode<synchronous>, transform_indices = @transform_3, window_bounds = array<i64: 32, 96>}, {pipeline_mode = #tpu.pipeline_mode<synchronous>, transform_indices = @transform_4, window_bounds = array<i64: 1, 96>}, {pipeline_mode = #tpu.pipeline_mode<synchronous>, transform_indices = @transform_5, window_bounds = array<i64: 32, 96>}, {pipeline_mode = #tpu.pipeline_mode<synchronous>, transform_indices = @transform_6, window_bounds = array<i64: 1, 96>}, {pipeline_mode = #tpu.pipeline_mode<synchronous>, transform_indices = @transform_7, window_bounds = array<i64: 32, 96>}, {pipeline_mode = #tpu.pipeline_mode<synchronous>, transform_indices = @transform_8, window_bounds = array<i64: 1, 96>}, {pipeline_mode = #tpu.pipeline_mode<synchronous>, transform_indices = @transform_9, window_bounds = array<i64: 32, 16>}, {pipeline_mode = #tpu.pipeline_mode<synchronous>, transform_indices = @transform_10, window_bounds = array<i64: 1, 16>}, {pipeline_mode = #tpu.pipeline_mode<synchronous>, transform_indices = @transform_11, window_bounds = array<i64: 64, 16>}]} {
    %c0 = arith.constant 0 : index
    %c0_0 = arith.constant 0 : index
    %0 = vector.load %arg2[%c0, %c0_0] : memref<41x96xf32, #tpu.memory_space<vmem>>, vector<41x96xf32>
    %c0_1 = arith.constant 0 : index
    %c0_2 = arith.constant 0 : index
    %1 = vector.load %arg6[%c0_1, %c0_2] : memref<32x96xf32, #tpu.memory_space<vmem>>, vector<32x96xf32>
    %c0_3 = arith.constant 0 : index
    %c0_4 = arith.constant 0 : index
    %2 = vector.load %arg3[%c0_3, %c0_4] : memref<1x96xf32, #tpu.memory_space<vmem>>, vector<1x96xf32>
    %c0_5 = arith.constant 0 : index
    %c0_6 = arith.constant 0 : index
    %3 = vector.load %arg7[%c0_5, %c0_6] : memref<1x96xf32, #tpu.memory_space<vmem>>, vector<1x96xf32>
    %c0_7 = arith.constant 0 : index
    %c0_8 = arith.constant 0 : index
    %4 = vector.load %arg4[%c0_7, %c0_8] : memref<32x96xf32, #tpu.memory_space<vmem>>, vector<32x96xf32>
    %c0_9 = arith.constant 0 : index
    %c0_10 = arith.constant 0 : index
    %5 = vector.load %arg8[%c0_9, %c0_10] : memref<32x96xf32, #tpu.memory_space<vmem>>, vector<32x96xf32>
    %c0_11 = arith.constant 0 : index
    %c0_12 = arith.constant 0 : index
    %6 = vector.load %arg5[%c0_11, %c0_12] : memref<1x96xf32, #tpu.memory_space<vmem>>, vector<1x96xf32>
    %c0_13 = arith.constant 0 : index
    %c0_14 = arith.constant 0 : index
    %7 = vector.load %arg9[%c0_13, %c0_14] : memref<1x96xf32, #tpu.memory_space<vmem>>, vector<1x96xf32>
    %c0_15 = arith.constant 0 : index
    %c0_16 = arith.constant 0 : index
    %8 = vector.load %arg10[%c0_15, %c0_16] : memref<32x16xf32, #tpu.memory_space<vmem>>, vector<32x16xf32>
    %c0_17 = arith.constant 0 : index
    %c0_18 = arith.constant 0 : index
    %9 = vector.load %arg11[%c0_17, %c0_18] : memref<1x16xf32, #tpu.memory_space<vmem>>, vector<1x16xf32>
    %c0_19 = arith.constant 0 : index
    %c0_20 = arith.constant 0 : index
    %10 = vector.load %arg1[%c0_19, %c0_20] : memref<64x41xf32, #tpu.memory_space<vmem>>, vector<64x41xf32>
    %cst = arith.constant dense<0.000000e+00> : vector<64x96xf32>
    %11 = tpu.matmul %10, %0, %cst {dimension_numbers = #tpu.dot_dimension_numbers<[1], [0], [0], [1], [0, 0, 1, 1], [], []>} : vector<64x41xf32>, vector<41x96xf32>, vector<64x96xf32> -> vector<64x96xf32>
    %12 = vector.broadcast %2 : vector<1x96xf32> to vector<64x96xf32>
    %13 = arith.addf %11, %12 : vector<64x96xf32>
    %14 = vector.extract_strided_slice %13 {offsets = [0, 0], sizes = [8, 96], strides = [1, 1]} : vector<64x96xf32> to vector<8x96xf32>
    %15 = vector.extract_strided_slice %14 {offsets = [0, 0], sizes = [8, 64], strides = [1, 1]} : vector<8x96xf32> to vector<8x64xf32>
    %16 = vector.extract_strided_slice %6 {offsets = [0, 0], sizes = [1, 64], strides = [1, 1]} : vector<1x96xf32> to vector<1x64xf32>
    %17 = vector.broadcast %16 : vector<1x64xf32> to vector<8x64xf32>
    %18 = arith.addf %15, %17 : vector<8x64xf32>
    %19 = arith.negf %18 : vector<8x64xf32>
    %20 = math.exp %19 : vector<8x64xf32>
    %cst_21 = arith.constant 1.000000e+00 : f32
    %21 = vector.broadcast %cst_21 : f32 to vector<8x64xf32>
    %22 = arith.addf %21, %20 : vector<8x64xf32>
    %23 = arith.divf %21, %22 : vector<8x64xf32>
    %24 = vector.extract_strided_slice %23 {offsets = [0, 0], sizes = [8, 32], strides = [1, 1]} : vector<8x64xf32> to vector<8x32xf32>
    %25 = vector.extract_strided_slice %23 {offsets = [0, 32], sizes = [8, 32], strides = [1, 1]} : vector<8x64xf32> to vector<8x32xf32>
    %26 = vector.extract_strided_slice %14 {offsets = [0, 64], sizes = [8, 32], strides = [1, 1]} : vector<8x96xf32> to vector<8x32xf32>
    %27 = vector.extract_strided_slice %6 {offsets = [0, 64], sizes = [1, 32], strides = [1, 1]} : vector<1x96xf32> to vector<1x32xf32>
    %28 = vector.broadcast %27 : vector<1x32xf32> to vector<8x32xf32>
    %29 = arith.mulf %24, %28 : vector<8x32xf32>
    %30 = arith.addf %26, %29 : vector<8x32xf32>
    %31 = math.tanh %30 : vector<8x32xf32>
    %cst_22 = arith.constant 1.000000e+00 : f32
    %32 = vector.broadcast %cst_22 : f32 to vector<8x32xf32>
    %33 = arith.subf %32, %25 : vector<8x32xf32>
    %34 = arith.mulf %33, %31 : vector<8x32xf32>
    %cst_23 = arith.constant dense<0.000000e+00> : vector<8x96xf32>
    %35 = tpu.matmul %34, %1, %cst_23 {dimension_numbers = #tpu.dot_dimension_numbers<[1], [0], [0], [1], [0, 0, 1, 1], [], []>} : vector<8x32xf32>, vector<32x96xf32>, vector<8x96xf32> -> vector<8x96xf32>
    %36 = vector.broadcast %3 : vector<1x96xf32> to vector<8x96xf32>
    %37 = arith.addf %35, %36 : vector<8x96xf32>
    %38 = vector.extract_strided_slice %37 {offsets = [0, 0], sizes = [8, 64], strides = [1, 1]} : vector<8x96xf32> to vector<8x64xf32>
    %39 = vector.extract_strided_slice %7 {offsets = [0, 0], sizes = [1, 64], strides = [1, 1]} : vector<1x96xf32> to vector<1x64xf32>
    %40 = vector.broadcast %39 : vector<1x64xf32> to vector<8x64xf32>
    %41 = arith.addf %38, %40 : vector<8x64xf32>
    %42 = arith.negf %41 : vector<8x64xf32>
    %43 = math.exp %42 : vector<8x64xf32>
    %cst_24 = arith.constant 1.000000e+00 : f32
    %44 = vector.broadcast %cst_24 : f32 to vector<8x64xf32>
    %45 = arith.addf %44, %43 : vector<8x64xf32>
    %46 = arith.divf %44, %45 : vector<8x64xf32>
    %47 = vector.extract_strided_slice %46 {offsets = [0, 0], sizes = [8, 32], strides = [1, 1]} : vector<8x64xf32> to vector<8x32xf32>
    %48 = vector.extract_strided_slice %46 {offsets = [0, 32], sizes = [8, 32], strides = [1, 1]} : vector<8x64xf32> to vector<8x32xf32>
    %49 = vector.extract_strided_slice %37 {offsets = [0, 64], sizes = [8, 32], strides = [1, 1]} : vector<8x96xf32> to vector<8x32xf32>
    %50 = vector.extract_strided_slice %7 {offsets = [0, 64], sizes = [1, 32], strides = [1, 1]} : vector<1x96xf32> to vector<1x32xf32>
    %51 = vector.broadcast %50 : vector<1x32xf32> to vector<8x32xf32>
    %52 = arith.mulf %47, %51 : vector<8x32xf32>
    %53 = arith.addf %49, %52 : vector<8x32xf32>
    %54 = math.tanh %53 : vector<8x32xf32>
    %cst_25 = arith.constant 1.000000e+00 : f32
    %55 = vector.broadcast %cst_25 : f32 to vector<8x32xf32>
    %56 = arith.subf %55, %48 : vector<8x32xf32>
    %57 = arith.mulf %56, %54 : vector<8x32xf32>
    %c0_26 = arith.constant 0 : index
    %c0_27 = arith.constant 0 : index
    %58 = vector.load %arg13[%c0_26, %c0_27] : memref<64x32xf32, #tpu.memory_space<vmem>>, vector<8x32xf32>
    tpu.vector_store %arg13[%c0_26, %c0_27], %57 {strides = array<i32>} : memref<64x32xf32, #tpu.memory_space<vmem>>, vector<8x32xf32>,
    %59 = vector.extract_strided_slice %13 {offsets = [8, 0], sizes = [8, 96], strides = [1, 1]} : vector<64x96xf32> to vector<8x96xf32>
    %cst_28 = arith.constant dense<0.000000e+00> : vector<8x96xf32>
    %60 = tpu.matmul %34, %4, %cst_28 {dimension_numbers = #tpu.dot_dimension_numbers<[1], [0], [0], [1], [0, 0, 1, 1], [], []>} : vector<8x32xf32>, vector<32x96xf32>, vector<8x96xf32> -> vector<8x96xf32>
    %61 = vector.broadcast %6 : vector<1x96xf32> to vector<8x96xf32>
    %62 = arith.addf %60, %61 : vector<8x96xf32>
    %63 = vector.extract_strided_slice %59 {offsets = [0, 0], sizes = [8, 64], strides = [1, 1]} : vector<8x96xf32> to vector<8x64xf32>
    %64 = vector.extract_strided_slice %62 {offsets = [0, 0], sizes = [8, 64], strides = [1, 1]} : vector<8x96xf32> to vector<8x64xf32>
    %65 = arith.addf %63, %64 : vector<8x64xf32>
    %66 = arith.negf %65 : vector<8x64xf32>
    %67 = math.exp %66 : vector<8x64xf32>
    %cst_29 = arith.constant 1.000000e+00 : f32
    %68 = vector.broadcast %cst_29 : f32 to vector<8x64xf32>
    %69 = arith.addf %68, %67 : vector<8x64xf32>
    %70 = arith.divf %68, %69 : vector<8x64xf32>
    %71 = vector.extract_strided_slice %70 {offsets = [0, 0], sizes = [8, 32], strides = [1, 1]} : vector<8x64xf32> to vector<8x32xf32>
    %72 = vector.extract_strided_slice %70 {offsets = [0, 32], sizes = [8, 32], strides = [1, 1]} : vector<8x64xf32> to vector<8x32xf32>
    %73 = vector.extract_strided_slice %59 {offsets = [0, 64], sizes = [8, 32], strides = [1, 1]} : vector<8x96xf32> to vector<8x32xf32>
    %74 = vector.extract_strided_slice %62 {offsets = [0, 64], sizes = [8, 32], strides = [1, 1]} : vector<8x96xf32> to vector<8x32xf32>
    %75 = arith.mulf %71, %74 : vector<8x32xf32>
    %76 = arith.addf %73, %75 : vector<8x32xf32>
    %77 = math.tanh %76 : vector<8x32xf32>
    %78 = arith.subf %34, %77 : vector<8x32xf32>
    %79 = arith.mulf %72, %78 : vector<8x32xf32>
    %80 = arith.addf %77, %79 : vector<8x32xf32>
    %cst_30 = arith.constant dense<0.000000e+00> : vector<8x96xf32>
    %81 = tpu.matmul %80, %1, %cst_30 {dimension_numbers = #tpu.dot_dimension_numbers<[1], [0], [0], [1], [0, 0, 1, 1], [], []>} : vector<8x32xf32>, vector<32x96xf32>, vector<8x96xf32> -> vector<8x96xf32>
    %82 = vector.broadcast %3 : vector<1x96xf32> to vector<8x96xf32>
    %83 = arith.addf %81, %82 : vector<8x96xf32>
    %cst_31 = arith.constant dense<0.000000e+00> : vector<8x96xf32>
    %84 = tpu.matmul %57, %5, %cst_31 {dimension_numbers = #tpu.dot_dimension_numbers<[1], [0], [0], [1], [0, 0, 1, 1], [], []>} : vector<8x32xf32>, vector<32x96xf32>, vector<8x96xf32> -> vector<8x96xf32>
    %85 = vector.broadcast %7 : vector<1x96xf32> to vector<8x96xf32>
    %86 = arith.addf %84, %85 : vector<8x96xf32>
    %87 = vector.extract_strided_slice %83 {offsets = [0, 0], sizes = [8, 64], strides = [1, 1]} : vector<8x96xf32> to vector<8x64xf32>
    %88 = vector.extract_strided_slice %86 {offsets = [0, 0], sizes = [8, 64], strides = [1, 1]} : vector<8x96xf32> to vector<8x64xf32>
    %89 = arith.addf %87, %88 : vector<8x64xf32>
    %90 = arith.negf %89 : vector<8x64xf32>
    %91 = math.exp %90 : vector<8x64xf32>
    %cst_32 = arith.constant 1.000000e+00 : f32
    %92 = vector.broadcast %cst_32 : f32 to vector<8x64xf32>
    %93 = arith.addf %92, %91 : vector<8x64xf32>
    %94 = arith.divf %92, %93 : vector<8x64xf32>
    %95 = vector.extract_strided_slice %94 {offsets = [0, 0], sizes = [8, 32], strides = [1, 1]} : vector<8x64xf32> to vector<8x32xf32>
    %96 = vector.extract_strided_slice %94 {offsets = [0, 32], sizes = [8, 32], strides = [1, 1]} : vector<8x64xf32> to vector<8x32xf32>
    %97 = vector.extract_strided_slice %83 {offsets = [0, 64], sizes = [8, 32], strides = [1, 1]} : vector<8x96xf32> to vector<8x32xf32>
    %98 = vector.extract_strided_slice %86 {offsets = [0, 64], sizes = [8, 32], strides = [1, 1]} : vector<8x96xf32> to vector<8x32xf32>
    %99 = arith.mulf %95, %98 : vector<8x32xf32>
    %100 = arith.addf %97, %99 : vector<8x32xf32>
    %101 = math.tanh %100 : vector<8x32xf32>
    %102 = arith.subf %57, %101 : vector<8x32xf32>
    %103 = arith.mulf %96, %102 : vector<8x32xf32>
    %104 = arith.addf %101, %103 : vector<8x32xf32>
    %c8 = arith.constant 8 : index
    %c0_33 = arith.constant 0 : index
    %105 = vector.load %arg13[%c8, %c0_33] : memref<64x32xf32, #tpu.memory_space<vmem>>, vector<8x32xf32>
    tpu.vector_store %arg13[%c8, %c0_33], %104 {strides = array<i32>} : memref<64x32xf32, #tpu.memory_space<vmem>>, vector<8x32xf32>,
    %106 = vector.extract_strided_slice %13 {offsets = [16, 0], sizes = [8, 96], strides = [1, 1]} : vector<64x96xf32> to vector<8x96xf32>
    %cst_34 = arith.constant dense<0.000000e+00> : vector<8x96xf32>
    %107 = tpu.matmul %80, %4, %cst_34 {dimension_numbers = #tpu.dot_dimension_numbers<[1], [0], [0], [1], [0, 0, 1, 1], [], []>} : vector<8x32xf32>, vector<32x96xf32>, vector<8x96xf32> -> vector<8x96xf32>
    %108 = vector.broadcast %6 : vector<1x96xf32> to vector<8x96xf32>
    %109 = arith.addf %107, %108 : vector<8x96xf32>
    %110 = vector.extract_strided_slice %106 {offsets = [0, 0], sizes = [8, 64], strides = [1, 1]} : vector<8x96xf32> to vector<8x64xf32>
    %111 = vector.extract_strided_slice %109 {offsets = [0, 0], sizes = [8, 64], strides = [1, 1]} : vector<8x96xf32> to vector<8x64xf32>
    %112 = arith.addf %110, %111 : vector<8x64xf32>
    %113 = arith.negf %112 : vector<8x64xf32>
    %114 = math.exp %113 : vector<8x64xf32>
    %cst_35 = arith.constant 1.000000e+00 : f32
    %115 = vector.broadcast %cst_35 : f32 to vector<8x64xf32>
    %116 = arith.addf %115, %114 : vector<8x64xf32>
    %117 = arith.divf %115, %116 : vector<8x64xf32>
    %118 = vector.extract_strided_slice %117 {offsets = [0, 0], sizes = [8, 32], strides = [1, 1]} : vector<8x64xf32> to vector<8x32xf32>
    %119 = vector.extract_strided_slice %117 {offsets = [0, 32], sizes = [8, 32], strides = [1, 1]} : vector<8x64xf32> to vector<8x32xf32>
    %120 = vector.extract_strided_slice %106 {offsets = [0, 64], sizes = [8, 32], strides = [1, 1]} : vector<8x96xf32> to vector<8x32xf32>
    %121 = vector.extract_strided_slice %109 {offsets = [0, 64], sizes = [8, 32], strides = [1, 1]} : vector<8x96xf32> to vector<8x32xf32>
    %122 = arith.mulf %118, %121 : vector<8x32xf32>
    %123 = arith.addf %120, %122 : vector<8x32xf32>
    %124 = math.tanh %123 : vector<8x32xf32>
    %125 = arith.subf %80, %124 : vector<8x32xf32>
    %126 = arith.mulf %119, %125 : vector<8x32xf32>
    %127 = arith.addf %124, %126 : vector<8x32xf32>
    %cst_36 = arith.constant dense<0.000000e+00> : vector<8x96xf32>
    %128 = tpu.matmul %127, %1, %cst_36 {dimension_numbers = #tpu.dot_dimension_numbers<[1], [0], [0], [1], [0, 0, 1, 1], [], []>} : vector<8x32xf32>, vector<32x96xf32>, vector<8x96xf32> -> vector<8x96xf32>
    %129 = vector.broadcast %3 : vector<1x96xf32> to vector<8x96xf32>
    %130 = arith.addf %128, %129 : vector<8x96xf32>
    %cst_37 = arith.constant dense<0.000000e+00> : vector<8x96xf32>
    %131 = tpu.matmul %104, %5, %cst_37 {dimension_numbers = #tpu.dot_dimension_numbers<[1], [0], [0], [1], [0, 0, 1, 1], [], []>} : vector<8x32xf32>, vector<32x96xf32>, vector<8x96xf32> -> vector<8x96xf32>
    %132 = vector.broadcast %7 : vector<1x96xf32> to vector<8x96xf32>
    %133 = arith.addf %131, %132 : vector<8x96xf32>
    %134 = vector.extract_strided_slice %130 {offsets = [0, 0], sizes = [8, 64], strides = [1, 1]} : vector<8x96xf32> to vector<8x64xf32>
    %135 = vector.extract_strided_slice %133 {offsets = [0, 0], sizes = [8, 64], strides = [1, 1]} : vector<8x96xf32> to vector<8x64xf32>
    %136 = arith.addf %134, %135 : vector<8x64xf32>
    %137 = arith.negf %136 : vector<8x64xf32>
    %138 = math.exp %137 : vector<8x64xf32>
    %cst_38 = arith.constant 1.000000e+00 : f32
    %139 = vector.broadcast %cst_38 : f32 to vector<8x64xf32>
    %140 = arith.addf %139, %138 : vector<8x64xf32>
    %141 = arith.divf %139, %140 : vector<8x64xf32>
    %142 = vector.extract_strided_slice %141 {offsets = [0, 0], sizes = [8, 32], strides = [1, 1]} : vector<8x64xf32> to vector<8x32xf32>
    %143 = vector.extract_strided_slice %141 {offsets = [0, 32], sizes = [8, 32], strides = [1, 1]} : vector<8x64xf32> to vector<8x32xf32>
    %144 = vector.extract_strided_slice %130 {offsets = [0, 64], sizes = [8, 32], strides = [1, 1]} : vector<8x96xf32> to vector<8x32xf32>
    %145 = vector.extract_strided_slice %133 {offsets = [0, 64], sizes = [8, 32], strides = [1, 1]} : vector<8x96xf32> to vector<8x32xf32>
    %146 = arith.mulf %142, %145 : vector<8x32xf32>
    %147 = arith.addf %144, %146 : vector<8x32xf32>
    %148 = math.tanh %147 : vector<8x32xf32>
    %149 = arith.subf %104, %148 : vector<8x32xf32>
    %150 = arith.mulf %143, %149 : vector<8x32xf32>
    %151 = arith.addf %148, %150 : vector<8x32xf32>
    %c16 = arith.constant 16 : index
    %c0_39 = arith.constant 0 : index
    %152 = vector.load %arg13[%c16, %c0_39] : memref<64x32xf32, #tpu.memory_space<vmem>>, vector<8x32xf32>
    tpu.vector_store %arg13[%c16, %c0_39], %151 {strides = array<i32>} : memref<64x32xf32, #tpu.memory_space<vmem>>, vector<8x32xf32>,
    %153 = vector.extract_strided_slice %13 {offsets = [24, 0], sizes = [8, 96], strides = [1, 1]} : vector<64x96xf32> to vector<8x96xf32>
    %cst_40 = arith.constant dense<0.000000e+00> : vector<8x96xf32>
    %154 = tpu.matmul %127, %4, %cst_40 {dimension_numbers = #tpu.dot_dimension_numbers<[1], [0], [0], [1], [0, 0, 1, 1], [], []>} : vector<8x32xf32>, vector<32x96xf32>, vector<8x96xf32> -> vector<8x96xf32>
    %155 = vector.broadcast %6 : vector<1x96xf32> to vector<8x96xf32>
    %156 = arith.addf %154, %155 : vector<8x96xf32>
    %157 = vector.extract_strided_slice %153 {offsets = [0, 0], sizes = [8, 64], strides = [1, 1]} : vector<8x96xf32> to vector<8x64xf32>
    %158 = vector.extract_strided_slice %156 {offsets = [0, 0], sizes = [8, 64], strides = [1, 1]} : vector<8x96xf32> to vector<8x64xf32>
    %159 = arith.addf %157, %158 : vector<8x64xf32>
    %160 = arith.negf %159 : vector<8x64xf32>
    %161 = math.exp %160 : vector<8x64xf32>
    %cst_41 = arith.constant 1.000000e+00 : f32
    %162 = vector.broadcast %cst_41 : f32 to vector<8x64xf32>
    %163 = arith.addf %162, %161 : vector<8x64xf32>
    %164 = arith.divf %162, %163 : vector<8x64xf32>
    %165 = vector.extract_strided_slice %164 {offsets = [0, 0], sizes = [8, 32], strides = [1, 1]} : vector<8x64xf32> to vector<8x32xf32>
    %166 = vector.extract_strided_slice %164 {offsets = [0, 32], sizes = [8, 32], strides = [1, 1]} : vector<8x64xf32> to vector<8x32xf32>
    %167 = vector.extract_strided_slice %153 {offsets = [0, 64], sizes = [8, 32], strides = [1, 1]} : vector<8x96xf32> to vector<8x32xf32>
    %168 = vector.extract_strided_slice %156 {offsets = [0, 64], sizes = [8, 32], strides = [1, 1]} : vector<8x96xf32> to vector<8x32xf32>
    %169 = arith.mulf %165, %168 : vector<8x32xf32>
    %170 = arith.addf %167, %169 : vector<8x32xf32>
    %171 = math.tanh %170 : vector<8x32xf32>
    %172 = arith.subf %127, %171 : vector<8x32xf32>
    %173 = arith.mulf %166, %172 : vector<8x32xf32>
    %174 = arith.addf %171, %173 : vector<8x32xf32>
    %cst_42 = arith.constant dense<0.000000e+00> : vector<8x96xf32>
    %175 = tpu.matmul %174, %1, %cst_42 {dimension_numbers = #tpu.dot_dimension_numbers<[1], [0], [0], [1], [0, 0, 1, 1], [], []>} : vector<8x32xf32>, vector<32x96xf32>, vector<8x96xf32> -> vector<8x96xf32>
    %176 = vector.broadcast %3 : vector<1x96xf32> to vector<8x96xf32>
    %177 = arith.addf %175, %176 : vector<8x96xf32>
    %cst_43 = arith.constant dense<0.000000e+00> : vector<8x96xf32>
    %178 = tpu.matmul %151, %5, %cst_43 {dimension_numbers = #tpu.dot_dimension_numbers<[1], [0], [0], [1], [0, 0, 1, 1], [], []>} : vector<8x32xf32>, vector<32x96xf32>, vector<8x96xf32> -> vector<8x96xf32>
    %179 = vector.broadcast %7 : vector<1x96xf32> to vector<8x96xf32>
    %180 = arith.addf %178, %179 : vector<8x96xf32>
    %181 = vector.extract_strided_slice %177 {offsets = [0, 0], sizes = [8, 64], strides = [1, 1]} : vector<8x96xf32> to vector<8x64xf32>
    %182 = vector.extract_strided_slice %180 {offsets = [0, 0], sizes = [8, 64], strides = [1, 1]} : vector<8x96xf32> to vector<8x64xf32>
    %183 = arith.addf %181, %182 : vector<8x64xf32>
    %184 = arith.negf %183 : vector<8x64xf32>
    %185 = math.exp %184 : vector<8x64xf32>
    %cst_44 = arith.constant 1.000000e+00 : f32
    %186 = vector.broadcast %cst_44 : f32 to vector<8x64xf32>
    %187 = arith.addf %186, %185 : vector<8x64xf32>
    %188 = arith.divf %186, %187 : vector<8x64xf32>
    %189 = vector.extract_strided_slice %188 {offsets = [0, 0], sizes = [8, 32], strides = [1, 1]} : vector<8x64xf32> to vector<8x32xf32>
    %190 = vector.extract_strided_slice %188 {offsets = [0, 32], sizes = [8, 32], strides = [1, 1]} : vector<8x64xf32> to vector<8x32xf32>
    %191 = vector.extract_strided_slice %177 {offsets = [0, 64], sizes = [8, 32], strides = [1, 1]} : vector<8x96xf32> to vector<8x32xf32>
    %192 = vector.extract_strided_slice %180 {offsets = [0, 64], sizes = [8, 32], strides = [1, 1]} : vector<8x96xf32> to vector<8x32xf32>
    %193 = arith.mulf %189, %192 : vector<8x32xf32>
    %194 = arith.addf %191, %193 : vector<8x32xf32>
    %195 = math.tanh %194 : vector<8x32xf32>
    %196 = arith.subf %151, %195 : vector<8x32xf32>
    %197 = arith.mulf %190, %196 : vector<8x32xf32>
    %198 = arith.addf %195, %197 : vector<8x32xf32>
    %c24 = arith.constant 24 : index
    %c0_45 = arith.constant 0 : index
    %199 = vector.load %arg13[%c24, %c0_45] : memref<64x32xf32, #tpu.memory_space<vmem>>, vector<8x32xf32>
    tpu.vector_store %arg13[%c24, %c0_45], %198 {strides = array<i32>} : memref<64x32xf32, #tpu.memory_space<vmem>>, vector<8x32xf32>,
    %200 = vector.extract_strided_slice %13 {offsets = [32, 0], sizes = [8, 96], strides = [1, 1]} : vector<64x96xf32> to vector<8x96xf32>
    %cst_46 = arith.constant dense<0.000000e+00> : vector<8x96xf32>
    %201 = tpu.matmul %174, %4, %cst_46 {dimension_numbers = #tpu.dot_dimension_numbers<[1], [0], [0], [1], [0, 0, 1, 1], [], []>} : vector<8x32xf32>, vector<32x96xf32>, vector<8x96xf32> -> vector<8x96xf32>
    %202 = vector.broadcast %6 : vector<1x96xf32> to vector<8x96xf32>
    %203 = arith.addf %201, %202 : vector<8x96xf32>
    %204 = vector.extract_strided_slice %200 {offsets = [0, 0], sizes = [8, 64], strides = [1, 1]} : vector<8x96xf32> to vector<8x64xf32>
    %205 = vector.extract_strided_slice %203 {offsets = [0, 0], sizes = [8, 64], strides = [1, 1]} : vector<8x96xf32> to vector<8x64xf32>
    %206 = arith.addf %204, %205 : vector<8x64xf32>
    %207 = arith.negf %206 : vector<8x64xf32>
    %208 = math.exp %207 : vector<8x64xf32>
    %cst_47 = arith.constant 1.000000e+00 : f32
    %209 = vector.broadcast %cst_47 : f32 to vector<8x64xf32>
    %210 = arith.addf %209, %208 : vector<8x64xf32>
    %211 = arith.divf %209, %210 : vector<8x64xf32>
    %212 = vector.extract_strided_slice %211 {offsets = [0, 0], sizes = [8, 32], strides = [1, 1]} : vector<8x64xf32> to vector<8x32xf32>
    %213 = vector.extract_strided_slice %211 {offsets = [0, 32], sizes = [8, 32], strides = [1, 1]} : vector<8x64xf32> to vector<8x32xf32>
    %214 = vector.extract_strided_slice %200 {offsets = [0, 64], sizes = [8, 32], strides = [1, 1]} : vector<8x96xf32> to vector<8x32xf32>
    %215 = vector.extract_strided_slice %203 {offsets = [0, 64], sizes = [8, 32], strides = [1, 1]} : vector<8x96xf32> to vector<8x32xf32>
    %216 = arith.mulf %212, %215 : vector<8x32xf32>
    %217 = arith.addf %214, %216 : vector<8x32xf32>
    %218 = math.tanh %217 : vector<8x32xf32>
    %219 = arith.subf %174, %218 : vector<8x32xf32>
    %220 = arith.mulf %213, %219 : vector<8x32xf32>
    %221 = arith.addf %218, %220 : vector<8x32xf32>
    %cst_48 = arith.constant dense<0.000000e+00> : vector<8x96xf32>
    %222 = tpu.matmul %221, %1, %cst_48 {dimension_numbers = #tpu.dot_dimension_numbers<[1], [0], [0], [1], [0, 0, 1, 1], [], []>} : vector<8x32xf32>, vector<32x96xf32>, vector<8x96xf32> -> vector<8x96xf32>
    %223 = vector.broadcast %3 : vector<1x96xf32> to vector<8x96xf32>
    %224 = arith.addf %222, %223 : vector<8x96xf32>
    %cst_49 = arith.constant dense<0.000000e+00> : vector<8x96xf32>
    %225 = tpu.matmul %198, %5, %cst_49 {dimension_numbers = #tpu.dot_dimension_numbers<[1], [0], [0], [1], [0, 0, 1, 1], [], []>} : vector<8x32xf32>, vector<32x96xf32>, vector<8x96xf32> -> vector<8x96xf32>
    %226 = vector.broadcast %7 : vector<1x96xf32> to vector<8x96xf32>
    %227 = arith.addf %225, %226 : vector<8x96xf32>
    %228 = vector.extract_strided_slice %224 {offsets = [0, 0], sizes = [8, 64], strides = [1, 1]} : vector<8x96xf32> to vector<8x64xf32>
    %229 = vector.extract_strided_slice %227 {offsets = [0, 0], sizes = [8, 64], strides = [1, 1]} : vector<8x96xf32> to vector<8x64xf32>
    %230 = arith.addf %228, %229 : vector<8x64xf32>
    %231 = arith.negf %230 : vector<8x64xf32>
    %232 = math.exp %231 : vector<8x64xf32>
    %cst_50 = arith.constant 1.000000e+00 : f32
    %233 = vector.broadcast %cst_50 : f32 to vector<8x64xf32>
    %234 = arith.addf %233, %232 : vector<8x64xf32>
    %235 = arith.divf %233, %234 : vector<8x64xf32>
    %236 = vector.extract_strided_slice %235 {offsets = [0, 0], sizes = [8, 32], strides = [1, 1]} : vector<8x64xf32> to vector<8x32xf32>
    %237 = vector.extract_strided_slice %235 {offsets = [0, 32], sizes = [8, 32], strides = [1, 1]} : vector<8x64xf32> to vector<8x32xf32>
    %238 = vector.extract_strided_slice %224 {offsets = [0, 64], sizes = [8, 32], strides = [1, 1]} : vector<8x96xf32> to vector<8x32xf32>
    %239 = vector.extract_strided_slice %227 {offsets = [0, 64], sizes = [8, 32], strides = [1, 1]} : vector<8x96xf32> to vector<8x32xf32>
    %240 = arith.mulf %236, %239 : vector<8x32xf32>
    %241 = arith.addf %238, %240 : vector<8x32xf32>
    %242 = math.tanh %241 : vector<8x32xf32>
    %243 = arith.subf %198, %242 : vector<8x32xf32>
    %244 = arith.mulf %237, %243 : vector<8x32xf32>
    %245 = arith.addf %242, %244 : vector<8x32xf32>
    %c32 = arith.constant 32 : index
    %c0_51 = arith.constant 0 : index
    %246 = vector.load %arg13[%c32, %c0_51] : memref<64x32xf32, #tpu.memory_space<vmem>>, vector<8x32xf32>
    tpu.vector_store %arg13[%c32, %c0_51], %245 {strides = array<i32>} : memref<64x32xf32, #tpu.memory_space<vmem>>, vector<8x32xf32>,
    %247 = vector.extract_strided_slice %13 {offsets = [40, 0], sizes = [8, 96], strides = [1, 1]} : vector<64x96xf32> to vector<8x96xf32>
    %cst_52 = arith.constant dense<0.000000e+00> : vector<8x96xf32>
    %248 = tpu.matmul %221, %4, %cst_52 {dimension_numbers = #tpu.dot_dimension_numbers<[1], [0], [0], [1], [0, 0, 1, 1], [], []>} : vector<8x32xf32>, vector<32x96xf32>, vector<8x96xf32> -> vector<8x96xf32>
    %249 = vector.broadcast %6 : vector<1x96xf32> to vector<8x96xf32>
    %250 = arith.addf %248, %249 : vector<8x96xf32>
    %251 = vector.extract_strided_slice %247 {offsets = [0, 0], sizes = [8, 64], strides = [1, 1]} : vector<8x96xf32> to vector<8x64xf32>
    %252 = vector.extract_strided_slice %250 {offsets = [0, 0], sizes = [8, 64], strides = [1, 1]} : vector<8x96xf32> to vector<8x64xf32>
    %253 = arith.addf %251, %252 : vector<8x64xf32>
    %254 = arith.negf %253 : vector<8x64xf32>
    %255 = math.exp %254 : vector<8x64xf32>
    %cst_53 = arith.constant 1.000000e+00 : f32
    %256 = vector.broadcast %cst_53 : f32 to vector<8x64xf32>
    %257 = arith.addf %256, %255 : vector<8x64xf32>
    %258 = arith.divf %256, %257 : vector<8x64xf32>
    %259 = vector.extract_strided_slice %258 {offsets = [0, 0], sizes = [8, 32], strides = [1, 1]} : vector<8x64xf32> to vector<8x32xf32>
    %260 = vector.extract_strided_slice %258 {offsets = [0, 32], sizes = [8, 32], strides = [1, 1]} : vector<8x64xf32> to vector<8x32xf32>
    %261 = vector.extract_strided_slice %247 {offsets = [0, 64], sizes = [8, 32], strides = [1, 1]} : vector<8x96xf32> to vector<8x32xf32>
    %262 = vector.extract_strided_slice %250 {offsets = [0, 64], sizes = [8, 32], strides = [1, 1]} : vector<8x96xf32> to vector<8x32xf32>
    %263 = arith.mulf %259, %262 : vector<8x32xf32>
    %264 = arith.addf %261, %263 : vector<8x32xf32>
    %265 = math.tanh %264 : vector<8x32xf32>
    %266 = arith.subf %221, %265 : vector<8x32xf32>
    %267 = arith.mulf %260, %266 : vector<8x32xf32>
    %268 = arith.addf %265, %267 : vector<8x32xf32>
    %cst_54 = arith.constant dense<0.000000e+00> : vector<8x96xf32>
    %269 = tpu.matmul %268, %1, %cst_54 {dimension_numbers = #tpu.dot_dimension_numbers<[1], [0], [0], [1], [0, 0, 1, 1], [], []>} : vector<8x32xf32>, vector<32x96xf32>, vector<8x96xf32> -> vector<8x96xf32>
    %270 = vector.broadcast %3 : vector<1x96xf32> to vector<8x96xf32>
    %271 = arith.addf %269, %270 : vector<8x96xf32>
    %cst_55 = arith.constant dense<0.000000e+00> : vector<8x96xf32>
    %272 = tpu.matmul %245, %5, %cst_55 {dimension_numbers = #tpu.dot_dimension_numbers<[1], [0], [0], [1], [0, 0, 1, 1], [], []>} : vector<8x32xf32>, vector<32x96xf32>, vector<8x96xf32> -> vector<8x96xf32>
    %273 = vector.broadcast %7 : vector<1x96xf32> to vector<8x96xf32>
    %274 = arith.addf %272, %273 : vector<8x96xf32>
    %275 = vector.extract_strided_slice %271 {offsets = [0, 0], sizes = [8, 64], strides = [1, 1]} : vector<8x96xf32> to vector<8x64xf32>
    %276 = vector.extract_strided_slice %274 {offsets = [0, 0], sizes = [8, 64], strides = [1, 1]} : vector<8x96xf32> to vector<8x64xf32>
    %277 = arith.addf %275, %276 : vector<8x64xf32>
    %278 = arith.negf %277 : vector<8x64xf32>
    %279 = math.exp %278 : vector<8x64xf32>
    %cst_56 = arith.constant 1.000000e+00 : f32
    %280 = vector.broadcast %cst_56 : f32 to vector<8x64xf32>
    %281 = arith.addf %280, %279 : vector<8x64xf32>
    %282 = arith.divf %280, %281 : vector<8x64xf32>
    %283 = vector.extract_strided_slice %282 {offsets = [0, 0], sizes = [8, 32], strides = [1, 1]} : vector<8x64xf32> to vector<8x32xf32>
    %284 = vector.extract_strided_slice %282 {offsets = [0, 32], sizes = [8, 32], strides = [1, 1]} : vector<8x64xf32> to vector<8x32xf32>
    %285 = vector.extract_strided_slice %271 {offsets = [0, 64], sizes = [8, 32], strides = [1, 1]} : vector<8x96xf32> to vector<8x32xf32>
    %286 = vector.extract_strided_slice %274 {offsets = [0, 64], sizes = [8, 32], strides = [1, 1]} : vector<8x96xf32> to vector<8x32xf32>
    %287 = arith.mulf %283, %286 : vector<8x32xf32>
    %288 = arith.addf %285, %287 : vector<8x32xf32>
    %289 = math.tanh %288 : vector<8x32xf32>
    %290 = arith.subf %245, %289 : vector<8x32xf32>
    %291 = arith.mulf %284, %290 : vector<8x32xf32>
    %292 = arith.addf %289, %291 : vector<8x32xf32>
    %c40 = arith.constant 40 : index
    %c0_57 = arith.constant 0 : index
    %293 = vector.load %arg13[%c40, %c0_57] : memref<64x32xf32, #tpu.memory_space<vmem>>, vector<8x32xf32>
    tpu.vector_store %arg13[%c40, %c0_57], %292 {strides = array<i32>} : memref<64x32xf32, #tpu.memory_space<vmem>>, vector<8x32xf32>,
    %294 = vector.extract_strided_slice %13 {offsets = [48, 0], sizes = [8, 96], strides = [1, 1]} : vector<64x96xf32> to vector<8x96xf32>
    %cst_58 = arith.constant dense<0.000000e+00> : vector<8x96xf32>
    %295 = tpu.matmul %268, %4, %cst_58 {dimension_numbers = #tpu.dot_dimension_numbers<[1], [0], [0], [1], [0, 0, 1, 1], [], []>} : vector<8x32xf32>, vector<32x96xf32>, vector<8x96xf32> -> vector<8x96xf32>
    %296 = vector.broadcast %6 : vector<1x96xf32> to vector<8x96xf32>
    %297 = arith.addf %295, %296 : vector<8x96xf32>
    %298 = vector.extract_strided_slice %294 {offsets = [0, 0], sizes = [8, 64], strides = [1, 1]} : vector<8x96xf32> to vector<8x64xf32>
    %299 = vector.extract_strided_slice %297 {offsets = [0, 0], sizes = [8, 64], strides = [1, 1]} : vector<8x96xf32> to vector<8x64xf32>
    %300 = arith.addf %298, %299 : vector<8x64xf32>
    %301 = arith.negf %300 : vector<8x64xf32>
    %302 = math.exp %301 : vector<8x64xf32>
    %cst_59 = arith.constant 1.000000e+00 : f32
    %303 = vector.broadcast %cst_59 : f32 to vector<8x64xf32>
    %304 = arith.addf %303, %302 : vector<8x64xf32>
    %305 = arith.divf %303, %304 : vector<8x64xf32>
    %306 = vector.extract_strided_slice %305 {offsets = [0, 0], sizes = [8, 32], strides = [1, 1]} : vector<8x64xf32> to vector<8x32xf32>
    %307 = vector.extract_strided_slice %305 {offsets = [0, 32], sizes = [8, 32], strides = [1, 1]} : vector<8x64xf32> to vector<8x32xf32>
    %308 = vector.extract_strided_slice %294 {offsets = [0, 64], sizes = [8, 32], strides = [1, 1]} : vector<8x96xf32> to vector<8x32xf32>
    %309 = vector.extract_strided_slice %297 {offsets = [0, 64], sizes = [8, 32], strides = [1, 1]} : vector<8x96xf32> to vector<8x32xf32>
    %310 = arith.mulf %306, %309 : vector<8x32xf32>
    %311 = arith.addf %308, %310 : vector<8x32xf32>
    %312 = math.tanh %311 : vector<8x32xf32>
    %313 = arith.subf %268, %312 : vector<8x32xf32>
    %314 = arith.mulf %307, %313 : vector<8x32xf32>
    %315 = arith.addf %312, %314 : vector<8x32xf32>
    %cst_60 = arith.constant dense<0.000000e+00> : vector<8x96xf32>
    %316 = tpu.matmul %315, %1, %cst_60 {dimension_numbers = #tpu.dot_dimension_numbers<[1], [0], [0], [1], [0, 0, 1, 1], [], []>} : vector<8x32xf32>, vector<32x96xf32>, vector<8x96xf32> -> vector<8x96xf32>
    %317 = vector.broadcast %3 : vector<1x96xf32> to vector<8x96xf32>
    %318 = arith.addf %316, %317 : vector<8x96xf32>
    %cst_61 = arith.constant dense<0.000000e+00> : vector<8x96xf32>
    %319 = tpu.matmul %292, %5, %cst_61 {dimension_numbers = #tpu.dot_dimension_numbers<[1], [0], [0], [1], [0, 0, 1, 1], [], []>} : vector<8x32xf32>, vector<32x96xf32>, vector<8x96xf32> -> vector<8x96xf32>
    %320 = vector.broadcast %7 : vector<1x96xf32> to vector<8x96xf32>
    %321 = arith.addf %319, %320 : vector<8x96xf32>
    %322 = vector.extract_strided_slice %318 {offsets = [0, 0], sizes = [8, 64], strides = [1, 1]} : vector<8x96xf32> to vector<8x64xf32>
    %323 = vector.extract_strided_slice %321 {offsets = [0, 0], sizes = [8, 64], strides = [1, 1]} : vector<8x96xf32> to vector<8x64xf32>
    %324 = arith.addf %322, %323 : vector<8x64xf32>
    %325 = arith.negf %324 : vector<8x64xf32>
    %326 = math.exp %325 : vector<8x64xf32>
    %cst_62 = arith.constant 1.000000e+00 : f32
    %327 = vector.broadcast %cst_62 : f32 to vector<8x64xf32>
    %328 = arith.addf %327, %326 : vector<8x64xf32>
    %329 = arith.divf %327, %328 : vector<8x64xf32>
    %330 = vector.extract_strided_slice %329 {offsets = [0, 0], sizes = [8, 32], strides = [1, 1]} : vector<8x64xf32> to vector<8x32xf32>
    %331 = vector.extract_strided_slice %329 {offsets = [0, 32], sizes = [8, 32], strides = [1, 1]} : vector<8x64xf32> to vector<8x32xf32>
    %332 = vector.extract_strided_slice %318 {offsets = [0, 64], sizes = [8, 32], strides = [1, 1]} : vector<8x96xf32> to vector<8x32xf32>
    %333 = vector.extract_strided_slice %321 {offsets = [0, 64], sizes = [8, 32], strides = [1, 1]} : vector<8x96xf32> to vector<8x32xf32>
    %334 = arith.mulf %330, %333 : vector<8x32xf32>
    %335 = arith.addf %332, %334 : vector<8x32xf32>
    %336 = math.tanh %335 : vector<8x32xf32>
    %337 = arith.subf %292, %336 : vector<8x32xf32>
    %338 = arith.mulf %331, %337 : vector<8x32xf32>
    %339 = arith.addf %336, %338 : vector<8x32xf32>
    %c48 = arith.constant 48 : index
    %c0_63 = arith.constant 0 : index
    %340 = vector.load %arg13[%c48, %c0_63] : memref<64x32xf32, #tpu.memory_space<vmem>>, vector<8x32xf32>
    tpu.vector_store %arg13[%c48, %c0_63], %339 {strides = array<i32>} : memref<64x32xf32, #tpu.memory_space<vmem>>, vector<8x32xf32>,
    %341 = vector.extract_strided_slice %13 {offsets = [56, 0], sizes = [8, 96], strides = [1, 1]} : vector<64x96xf32> to vector<8x96xf32>
    %cst_64 = arith.constant dense<0.000000e+00> : vector<8x96xf32>
    %342 = tpu.matmul %315, %4, %cst_64 {dimension_numbers = #tpu.dot_dimension_numbers<[1], [0], [0], [1], [0, 0, 1, 1], [], []>} : vector<8x32xf32>, vector<32x96xf32>, vector<8x96xf32> -> vector<8x96xf32>
    %343 = vector.broadcast %6 : vector<1x96xf32> to vector<8x96xf32>
    %344 = arith.addf %342, %343 : vector<8x96xf32>
    %345 = vector.extract_strided_slice %341 {offsets = [0, 0], sizes = [8, 64], strides = [1, 1]} : vector<8x96xf32> to vector<8x64xf32>
    %346 = vector.extract_strided_slice %344 {offsets = [0, 0], sizes = [8, 64], strides = [1, 1]} : vector<8x96xf32> to vector<8x64xf32>
    %347 = arith.addf %345, %346 : vector<8x64xf32>
    %348 = arith.negf %347 : vector<8x64xf32>
    %349 = math.exp %348 : vector<8x64xf32>
    %cst_65 = arith.constant 1.000000e+00 : f32
    %350 = vector.broadcast %cst_65 : f32 to vector<8x64xf32>
    %351 = arith.addf %350, %349 : vector<8x64xf32>
    %352 = arith.divf %350, %351 : vector<8x64xf32>
    %353 = vector.extract_strided_slice %352 {offsets = [0, 0], sizes = [8, 32], strides = [1, 1]} : vector<8x64xf32> to vector<8x32xf32>
    %354 = vector.extract_strided_slice %352 {offsets = [0, 32], sizes = [8, 32], strides = [1, 1]} : vector<8x64xf32> to vector<8x32xf32>
    %355 = vector.extract_strided_slice %341 {offsets = [0, 64], sizes = [8, 32], strides = [1, 1]} : vector<8x96xf32> to vector<8x32xf32>
    %356 = vector.extract_strided_slice %344 {offsets = [0, 64], sizes = [8, 32], strides = [1, 1]} : vector<8x96xf32> to vector<8x32xf32>
    %357 = arith.mulf %353, %356 : vector<8x32xf32>
    %358 = arith.addf %355, %357 : vector<8x32xf32>
    %359 = math.tanh %358 : vector<8x32xf32>
    %360 = arith.subf %315, %359 : vector<8x32xf32>
    %361 = arith.mulf %354, %360 : vector<8x32xf32>
    %362 = arith.addf %359, %361 : vector<8x32xf32>
    %cst_66 = arith.constant dense<0.000000e+00> : vector<8x96xf32>
    %363 = tpu.matmul %362, %1, %cst_66 {dimension_numbers = #tpu.dot_dimension_numbers<[1], [0], [0], [1], [0, 0, 1, 1], [], []>} : vector<8x32xf32>, vector<32x96xf32>, vector<8x96xf32> -> vector<8x96xf32>
    %364 = vector.broadcast %3 : vector<1x96xf32> to vector<8x96xf32>
    %365 = arith.addf %363, %364 : vector<8x96xf32>
    %cst_67 = arith.constant dense<0.000000e+00> : vector<8x96xf32>
    %366 = tpu.matmul %339, %5, %cst_67 {dimension_numbers = #tpu.dot_dimension_numbers<[1], [0], [0], [1], [0, 0, 1, 1], [], []>} : vector<8x32xf32>, vector<32x96xf32>, vector<8x96xf32> -> vector<8x96xf32>
    %367 = vector.broadcast %7 : vector<1x96xf32> to vector<8x96xf32>
    %368 = arith.addf %366, %367 : vector<8x96xf32>
    %369 = vector.extract_strided_slice %365 {offsets = [0, 0], sizes = [8, 64], strides = [1, 1]} : vector<8x96xf32> to vector<8x64xf32>
    %370 = vector.extract_strided_slice %368 {offsets = [0, 0], sizes = [8, 64], strides = [1, 1]} : vector<8x96xf32> to vector<8x64xf32>
    %371 = arith.addf %369, %370 : vector<8x64xf32>
    %372 = arith.negf %371 : vector<8x64xf32>
    %373 = math.exp %372 : vector<8x64xf32>
    %cst_68 = arith.constant 1.000000e+00 : f32
    %374 = vector.broadcast %cst_68 : f32 to vector<8x64xf32>
    %375 = arith.addf %374, %373 : vector<8x64xf32>
    %376 = arith.divf %374, %375 : vector<8x64xf32>
    %377 = vector.extract_strided_slice %376 {offsets = [0, 0], sizes = [8, 32], strides = [1, 1]} : vector<8x64xf32> to vector<8x32xf32>
    %378 = vector.extract_strided_slice %376 {offsets = [0, 32], sizes = [8, 32], strides = [1, 1]} : vector<8x64xf32> to vector<8x32xf32>
    %379 = vector.extract_strided_slice %365 {offsets = [0, 64], sizes = [8, 32], strides = [1, 1]} : vector<8x96xf32> to vector<8x32xf32>
    %380 = vector.extract_strided_slice %368 {offsets = [0, 64], sizes = [8, 32], strides = [1, 1]} : vector<8x96xf32> to vector<8x32xf32>
    %381 = arith.mulf %377, %380 : vector<8x32xf32>
    %382 = arith.addf %379, %381 : vector<8x32xf32>
    %383 = math.tanh %382 : vector<8x32xf32>
    %384 = arith.subf %339, %383 : vector<8x32xf32>
    %385 = arith.mulf %378, %384 : vector<8x32xf32>
    %386 = arith.addf %383, %385 : vector<8x32xf32>
    %c56 = arith.constant 56 : index
    %c0_69 = arith.constant 0 : index
    %387 = vector.load %arg13[%c56, %c0_69] : memref<64x32xf32, #tpu.memory_space<vmem>>, vector<8x32xf32>
    tpu.vector_store %arg13[%c56, %c0_69], %386 {strides = array<i32>} : memref<64x32xf32, #tpu.memory_space<vmem>>, vector<8x32xf32>,
    %c0_70 = arith.constant 0 : index
    %c0_71 = arith.constant 0 : index
    %388 = vector.load %arg13[%c0_70, %c0_71] : memref<64x32xf32, #tpu.memory_space<vmem>>, vector<64x32xf32>
    %cst_72 = arith.constant dense<0.000000e+00> : vector<64x16xf32>
    %389 = tpu.matmul %388, %8, %cst_72 {dimension_numbers = #tpu.dot_dimension_numbers<[1], [0], [0], [1], [0, 0, 1, 1], [], []>} : vector<64x32xf32>, vector<32x16xf32>, vector<64x16xf32> -> vector<64x16xf32>
    %390 = vector.broadcast %9 : vector<1x16xf32> to vector<64x16xf32>
    %391 = arith.addf %389, %390 : vector<64x16xf32>
    %c0_73 = arith.constant 0 : index
    %c0_74 = arith.constant 0 : index
    %392 = vector.load %arg12[%c0_73, %c0_74] : memref<64x16xf32, #tpu.memory_space<vmem>>, vector<64x16xf32>
    tpu.vector_store %arg12[%c0_73, %c0_74], %391 {strides = array<i32>} : memref<64x16xf32, #tpu.memory_space<vmem>>, vector<64x16xf32>,
    return
  }
  func.func @transform_0(%arg0: i32) -> (i32, i32) {
    %c0_i32 = arith.constant 0 : i32
    %c0_i32_0 = arith.constant 0 : i32
    %c0_i32_1 = arith.constant 0 : i32
    return %c0_i32, %c0_i32_0 : i32, i32
  }
  func.func @transform_1(%arg0: i32) -> (i32, i32) {
    %c0_i32 = arith.constant 0 : i32
    %c0_i32_0 = arith.constant 0 : i32
    %c0_i32_1 = arith.constant 0 : i32
    return %c0_i32, %c0_i32_0 : i32, i32
  }
  func.func @transform_2(%arg0: i32) -> (i32, i32) {
    %c0_i32 = arith.constant 0 : i32
    %c0_i32_0 = arith.constant 0 : i32
    %c0_i32_1 = arith.constant 0 : i32
    return %c0_i32, %c0_i32_0 : i32, i32
  }
  func.func @transform_3(%arg0: i32) -> (i32, i32) {
    %c0_i32 = arith.constant 0 : i32
    %c0_i32_0 = arith.constant 0 : i32
    %c0_i32_1 = arith.constant 0 : i32
    return %c0_i32, %c0_i32_0 : i32, i32
  }
  func.func @transform_4(%arg0: i32) -> (i32, i32) {
    %c0_i32 = arith.constant 0 : i32
    %c0_i32_0 = arith.constant 0 : i32
    %c0_i32_1 = arith.constant 0 : i32
    return %c0_i32, %c0_i32_0 : i32, i32
  }
  func.func @transform_5(%arg0: i32) -> (i32, i32) {
    %c0_i32 = arith.constant 0 : i32
    %c0_i32_0 = arith.constant 0 : i32
    %c0_i32_1 = arith.constant 0 : i32
    return %c0_i32, %c0_i32_0 : i32, i32
  }
  func.func @transform_6(%arg0: i32) -> (i32, i32) {
    %c0_i32 = arith.constant 0 : i32
    %c0_i32_0 = arith.constant 0 : i32
    %c0_i32_1 = arith.constant 0 : i32
    return %c0_i32, %c0_i32_0 : i32, i32
  }
  func.func @transform_7(%arg0: i32) -> (i32, i32) {
    %c0_i32 = arith.constant 0 : i32
    %c0_i32_0 = arith.constant 0 : i32
    %c0_i32_1 = arith.constant 0 : i32
    return %c0_i32, %c0_i32_0 : i32, i32
  }
  func.func @transform_8(%arg0: i32) -> (i32, i32) {
    %c0_i32 = arith.constant 0 : i32
    %c0_i32_0 = arith.constant 0 : i32
    %c0_i32_1 = arith.constant 0 : i32
    return %c0_i32, %c0_i32_0 : i32, i32
  }
  func.func @transform_9(%arg0: i32) -> (i32, i32) {
    %c0_i32 = arith.constant 0 : i32
    %c0_i32_0 = arith.constant 0 : i32
    %c0_i32_1 = arith.constant 0 : i32
    return %c0_i32, %c0_i32_0 : i32, i32
  }
  func.func @transform_10(%arg0: i32) -> (i32, i32) {
    %c0_i32 = arith.constant 0 : i32
    %c0_i32_0 = arith.constant 0 : i32
    %c0_i32_1 = arith.constant 0 : i32
    return %c0_i32, %c0_i32_0 : i32, i32
  }
  func.func @transform_11(%arg0: i32) -> (i32, i32) {
    %c0_i32 = arith.constant 0 : i32
    %c0_i32_0 = arith.constant 0 : i32
    %c0_i32_1 = arith.constant 0 : i32
    return %c0_i32, %c0_i32_0 : i32, i32
  }
}

</mosaic_0001>

<bundles_post_ra>
// kernel: tpu_custom_call.1
= control target key start
LH: loop header
LB: loop body
LE: loop exit
PB: predicated region body
PF: predicated region fallthrough
CT: control target
= control target key end

     0   :  { %16 = vsyncpa [#allocation4], 0  ;;  %s3956_s0 = inlined_call_operand.vmem [shape: f32[64,41], index: 0, kind: input, shape index: {}]   ;;  %s3957_s1 = inlined_call_operand.vmem [shape: f32[41,96], index: 1, kind: input, shape index: {}]   ;;  %s3958_s2 = inlined_call_operand.hbm [shape: f32[1,96], index: 2, kind: input, shape index: {}]   ;;  %s3959_s3 = inlined_call_operand.vmem [shape: f32[32,96], index: 3, kind: input, shape index: {}]   ;;  %s3960_s4 = inlined_call_operand.hbm [shape: f32[1,96], index: 4, kind: input, shape index: {}]   ;;  %s3961_s5 = inlined_call_operand.vmem [shape: f32[32,96], index: 5, kind: input, shape index: {}]   ;;  %s3962_s6 = inlined_call_operand.hbm [shape: f32[1,96], index: 6, kind: input, shape index: {}]   ;;  %s3963_s7 = inlined_call_operand.hbm [shape: f32[32,96], index: 7, kind: input, shape index: {}]   ;;  %s3964_s8 = inlined_call_operand.hbm [shape: f32[1,96], index: 8, kind: input, shape index: {}]   ;;  %s3965_s9 = inlined_call_operand.vmem [shape: f32[32,16], index: 9, kind: input, shape index: {}]   ;;  %s3966_s10 = inlined_call_operand.vmem [shape: f32[1,16], index: 10, kind: input, shape index: {}]   ;;  %s3967_s11 = inlined_call_operand.vmem [shape: f32[64,16], index: 11, kind: output, shape index: {}]  }
   0x1   :  { %17 = vsyncpa [#allocation6], 0 }
   0x2   :  { %18 = vsyncpa [#allocation9], 0  ;;  %s3245_s17 = smov [#allocation5]   ;;  %s3246_s19 = smov [#allocation8]  }
   0x3   :  { %s41_s18 = sshll.u32 %s3245_s17, 4  ;;  %s62_s20 = sshll.u32 %s3246_s19, 4  ;;  %s42_s18 = int_to_ptr.vmem [resolvable:$true] %s41_s18  ;;  %s63_s20 = int_to_ptr.vmem [resolvable:$true] %s62_s20 }
   0x4   :  { %s3147_s21 = scalar_lea.vmem %s42_s18, 16  ;;  %s3151_s22 = scalar_lea.vmem %s42_s18, 32 }
   0x5   :  { %p3148_p0 = scmp.ne.s32.totalorder %s42_s18, %s3147_s21  ;;  %p3152_p1 = scmp.lt.s32.totalorder %s42_s18, %s42_s18 }
   0x6   :  { %p3153_p2 = scmp.lt.s32.totalorder %s3151_s22, %s3147_s21 }
   0x8   :  { %p3154_p3 = por %p3153_p2, %p3152_p1 }
   0xa   :  { %p3155_p4 = pnand %p3154_p3, %p3148_p0 }
   0xc   :  { %3158 = shalt.err (!%p3155_p4)
}
   0xd   :  { %44 = dma.hbm_to_vmem [thread:$0]  %s3960_s4, 16, %s42_s18, [#allocation6]  }
   0xe   :  { %s3167_s25 = scalar_lea.vmem %s63_s20, 512  ;;  %p3172_p6 = scmp.lt.s32.totalorder %s63_s20, %s63_s20 }
   0xf   :  { %p3168_p5 = scmp.ne.s32.totalorder %s63_s20, %s3167_s25  ;;  %p3173_p7 = scmp.lt.s32.totalorder %s3167_s25, %s3167_s25 }
  0x11   :  { %p3174_p8 = por %p3173_p7, %p3172_p6 }
  0x13   :  { %p3175_p9 = pnand %p3174_p8, %p3168_p5 }
  0x15   :  { %3178 = shalt.err (!%p3175_p9)
}
  0x16   :  { %s3247_s26 = smov 128   ;;  %s3248_s27 = smov 8  }
  0x17   :  { %68 = dma.hbm_to_vmem [thread:$0]  %s3963_s7, 512, %s63_s20, [#allocation9], %s3247_s26, %s3247_s26, %s3248_s27  }
  0x18   :  { %s3249_s30 = smov [#allocation3]   ;;  %s3250_s13 = smov [#allocation7]  }
  0x19   :  { %s29_s12 = sshll.u32 %s3249_s30, 4  ;;  %s53_s14 = sshll.u32 %s3250_s13, 4  ;;  %s30_s12 = int_to_ptr.vmem [resolvable:$true] %s29_s12  ;;  %s54_s14 = int_to_ptr.vmem [resolvable:$true] %s53_s14 }
  0x1a   :  { %s3187_s4 = scalar_lea.vmem %s30_s12, 16  ;;  %s3191_s15 = scalar_lea.vmem %s30_s12, 32 }
  0x1b   :  { %p3188_p10 = scmp.ne.s32.totalorder %s30_s12, %s3187_s4  ;;  %p3192_p11 = scmp.lt.s32.totalorder %s30_s12, %s30_s12 }
  0x1c   :  { %p3193_p12 = scmp.lt.s32.totalorder %s3191_s15, %s3187_s4 }
  0x1e   :  { %p3194_p13 = por %p3193_p12, %p3192_p11 }
  0x20   :  { %p3195_p0 = pnand %p3194_p13, %p3188_p10 }
  0x22   :  { %3198 = shalt.err (!%p3195_p0)
}
  0x23   :  { %32 = dma.hbm_to_vmem [thread:$0]  %s3958_s2, 16, %s30_s12, [#allocation4]  }
  0x24   :  { %s3207_s18 = scalar_lea.vmem %s54_s14, 16  ;;  %s3211_s7 = scalar_lea.vmem %s54_s14, 32 }
  0x25   :  { %p3208_p1 = scmp.ne.s32.totalorder %s54_s14, %s3207_s18  ;;  %p3212_p2 = scmp.lt.s32.totalorder %s54_s14, %s54_s14 }
  0x26   :  { %p3213_p3 = scmp.lt.s32.totalorder %s3211_s7, %s3207_s18 }
  0x28   :  { %p3214_p4 = por %p3213_p3, %p3212_p2 }
  0x2a   :  { %p3215_p5 = pnand %p3214_p4, %p3208_p1 }
  0x2c   :  { %3218 = shalt.err (!%p3215_p5)
}
  0x2d   :  { %56 = dma.hbm_to_vmem [thread:$0]  %s3962_s6, 16, %s54_s14, [#allocation6]  }
  0x2e   :  { %s3251_s21 = smov [#allocation10]  }
  0x2f   :  { %s75_s22 = sshll.u32 %s3251_s21, 4  ;;  %s76_s22 = int_to_ptr.vmem [resolvable:$true] %s75_s22 }
  0x30   :  { %s3227_s23 = scalar_lea.vmem %s76_s22, 16  ;;  %s3231_s24 = scalar_lea.vmem %s76_s22, 32 }
  0x31   :  { %p3228_p6 = scmp.ne.s32.totalorder %s76_s22, %s3227_s23  ;;  %p3232_p7 = scmp.lt.s32.totalorder %s76_s22, %s76_s22 }
  0x32   :  { %p3233_p8 = scmp.lt.s32.totalorder %s3231_s24, %s3227_s23 }
  0x34   :  { %p3234_p9 = por %p3233_p8, %p3232_p7 }
  0x36   :  { %p3235_p10 = pnand %p3234_p9, %p3228_p6 }
  0x38   :  { %3238 = shalt.err (!%p3235_p10)
}
  0x39   :  { %78 = dma.hbm_to_vmem [thread:$0]  %s3964_s8, 16, %s76_s22, [#allocation9]  }
  0x3a   :  { %3239 = dma.done.wait [#allocation4], 16  }
  0x3b   :  { %3240 = vsyncadd [#allocation4], 4294967280 }
  0x3c   :  { %3241 = dma.done.wait [#allocation6], 32  }
  0x3d   :  { %3242 = vsyncadd [#allocation6], 4294967264 }
  0x3e   :  { %3243 = dma.done.wait [#allocation9], 528  }
  0x3f   :  { %3244 = vsyncadd [#allocation9], 4294966768  ;;  %vm164_vm0 = vcmask 1040384   ;;  %v103_v0 = vld [vmem:[%s3957_s1 + $0x28] sm:$0x1]  ;;  %v102_v1 = vld [vmem:[%s3957_s1 + $0x20] sm:$0xff] }
  0x40   :  { %vm139_vm1 = vcmask 334848   ;;  %2733 = vmatprep.subr.msk.mxu0 %vm164_vm0, %v103_v0  ;;  %v101_v2 = vld [vmem:[%s3957_s1 + $0x18] sm:$0xff]  ;;  %v125_v3 = vld [vmem:[%s3956_s0] sm:$0xff]  ;;  %v100_v5 = vld [vmem:[%s3957_s1 + $0x10] sm:$0xff]  ;;  %s3252_s4 = smov 64   ;;  %v3253_v25 = vmov 0.0  }
  0x41   :  { %2734 = vmatpush3.msk.msra.mxu0 %vm164_vm0, %v103_v0  ;;  %v3344_v4 = vld [vmem:[#allocation5] ss:$0 sm:$0xff]  ;;  %2745 = vmatprep.mubr.msk.f32.mxu0 %vm139_vm1, %v125_v3  ;;  %v99_v6 = vld [vmem:[%s3957_s1 + $0x8] sm:$0xff]  ;;  %v3364_v10 = vld [vmem:[#allocation3] ss:$0 sm:$0xff]  ;;  %vm3255_vm2 = vmmov 0  }
  0x42   :  { %2735 = vmatprep.subr.mxu0 %v102_v1  ;;  %286 = vrot.lane.b32.xlu0 %v3344_v4, %s3252_s4  ;;  %v98_v7 = vld [vmem:[%s3957_s1] sm:$0xff]  ;;  %v126_v8 = vld [vmem:[%s3956_s0 + $0x8] sm:$0xff]  ;;  %v127_v22 = vld [vmem:[%s3956_s0 + $0x10] sm:$0xff]  ;;  %vm311_vm3 = vcmask 261120   ;;  %s3256_s23 = smov 32   ;;  %vm2521_vm4 = vcmask 130048  }
  0x43   :  { %2736 = vmatpush3.msra.mxu0 %v102_v1  ;;  %v128_v23 = vld [vmem:[%s3956_s0 + $0x18] sm:$0xff]  ;;  %v129_v24 = vld [vmem:[%s3956_s0 + $0x20] sm:$0xff]  ;;  %2768 = vmatprep.subr.mxu1 %v3253_v25  ;;  %v3395_v28 = vld [vmem:[%s3961_s5 + $0x10] sm:$0xff] }
  0x44   :  { %2737 = vmatprep.subr.mxu0 %v101_v2  ;;  %v3383_v26 = vld [vmem:[%s3961_s5 + $0x18] sm:$0xff]  ;;  %v130_v29 = vld [vmem:[%s3956_s0 + $0x28] sm:$0xff]  ;;  %v3405_v30 = vld [vmem:[%s3959_s3 + $0x10] sm:$0xff]  ;;  %2776 = vmatprep.mubr.msk.f32.mxu1 %vm3255_vm2, %v3253_v25 }
  0x45   :  { %2738 = vmatpush3.msra.mxu0 %v101_v2  ;;  %v3388_v27 = vld [vmem:[%s3959_s3 + $0x18] sm:$0xff]  ;;  %v131_v31 = vld [vmem:[%s3956_s0 + $0x30] sm:$0xff]  ;;  %v3417_v32 = vld [vmem:[%s3961_s5 + $0x8] sm:$0xff] }
  0x46   :  { %2739 = vmatprep.subr.mxu0 %v100_v5  ;;  %2769 = vmatpush3.msra.mxu1 %v3388_v27  ;;  %v3424_v33 = vld [vmem:[%s3959_s3 + $0x8] sm:$0xff]  ;;  %v132_v34 = vld [vmem:[%s3956_s0 + $0x38] sm:$0xff]  ;;  %v3436_v35 = vld [vmem:[%s3961_s5] sm:$0xff]  ;;  %s3254_s0 = smov 96  }
  0x47   :  { %2740 = vmatpush3.msra.mxu0 %v100_v5  ;;  %2770 = vmatprep.subr.mxu1 %v3253_v25  ;;  %v3443_v36 = vld [vmem:[%s3959_s3] sm:$0xff] }
  0x48   :  { %2741 = vmatprep.subr.mxu0 %v99_v6  ;;  %2771 = vmatpush3.msra.mxu1 %v3405_v30  ;;  %v3488_v53 = vld [vmem:[#allocation10] ss:$0 sm:$0xff]  ;;  %v3492_v54 = vld [vmem:[#allocation7] ss:$0 sm:$0xff] }
  0x49   :  { %2742 = vmatpush3.msra.mxu0 %v99_v6  ;;  %2772 = vmatprep.subr.mxu1 %v3253_v25 }
  0x4a   :  { %2743 = vmatprep.subr.mxu0 %v98_v7  ;;  %2773 = vmatpush3.msra.mxu1 %v3424_v33 }
  0x4b   :  { %2744 = vmatpush3.msra.mxu0 %v98_v7  ;;  %2774 = vmatprep.subr.mxu1 %v3253_v25 }
  0x4c   :  { %2746 = vmatmul.mubr.msk.f32.vlgmr.msra.gmra.mxu0 %vm139_vm1, %v126_v8  ;;  %2757 = vmatprep.subr.mxu0 %v3253_v25 }
  0x4d   :  { %2748 = vmatprep.mubr.msk.f32.mxu0 %vm139_vm1, %v127_v22  ;;  %2758 = vmatpush3.msra.mxu0 %v3383_v26 }
  0x4e   :  { %2759 = vmatprep.subr.mxu0 %v3253_v25  ;;  %2775 = vmatpush3.msra.mxu1 %v3443_v36 }
  0x4f   :  { %2760 = vmatpush3.msra.mxu0 %v3395_v28  ;;  %2779 = vmatprep.subr.mxu1 %v3253_v25 }
  0x50   :  { %2749 = vmatmul.mubr.msk.f32.gmra.mxu0 %vm139_vm1, %v128_v23  ;;  %2761 = vmatprep.subr.mxu0 %v3253_v25 }
  0x51   :  { %2751 = vmatprep.mubr.msk.f32.mxu0 %vm139_vm1, %v129_v24  ;;  %2762 = vmatpush3.msra.mxu0 %v3417_v32 }
  0x52   :  { %2763 = vmatprep.subr.mxu0 %v3253_v25 }
  0x53   :  { %2764 = vmatpush3.msra.mxu0 %v3436_v35 }
  0x54   :  { %2752 = vmatmul.mubr.msk.f32.gmra.mxu0 %vm139_vm1, %v130_v29  ;;  %2790 = vmatprep.subr.mxu0 %v3253_v25 }
  0x55   :  { %2754 = vmatprep.mubr.msk.f32.mxu0 %vm139_vm1, %v131_v31 }
  0x58   :  { %2755 = vmatmul.mubr.msk.f32.gmra.mxu0 %vm139_vm1, %v132_v34 }
  0x59   :  { %2765 = vmatprep.mubr.msk.f32.mxu0 %vm3255_vm2, %v3253_v25 }
  0xb4   :  { %v287_v17 = vpop.permute.xlu0 %286 }
 0x10c   :  { %v3362_v9 = vpop.f32.mrf.mxu0 }
 0x10d   :  { %v240_v55 = vadd.f32 %v3362_v9, %v3364_v10 }
 0x10e   :  { %v234_v11 = vpop.f32.mrf.mxu0 }
 0x10f   :  { %v235_v12 = vadd.f32 %v3364_v10, %v234_v11 }
 0x110   :  { %v3474_v42 = vpop.f32.mrf.mxu0 }
 0x111   :  { %v279_v13 = vadd.f32 %v3344_v4, %v235_v12 }
 0x112   :  { %v3476_v43 = vpop.f32.mrf.mxu0 }
 0x113   :  { %v2548_v14 = vmul.f32 -1.442695, %v279_v13  ;;  %v3500_v13 = vld [vmem:[#allocation8 + $0x18] sm:$0xff] }
 0x114   :  { %v3478_v44 = vpop.f32.mrf.mxu0 }
 0x115   :  { %3031 = vpow2.f32 %v2548_v14  ;;  %v3502_v14 = vld [vmem:[#allocation8 + $0x10] sm:$0xff] }
 0x116   :  { %v3480_v45 = vpop.f32.mrf.mxu0 }
 0x118   :  { %v3482_v46 = vpop.f32.mrf.mxu0 }
 0x11a   :  { %v3484_v47 = vpop.f32.mrf.mxu0 }
 0x122   :  { %v3032_v15 = vpop.eup %3031 }
 0x123   :  { %v283_v16 = vadd.f32 1.0, %v3032_v15 }
 0x125   :  { %3033 = vrcp.f32 %v283_v16 }
 0x132   :  { %v3034_v18 = vpop.eup %3033 }
 0x133   :  { %v289_v19 = vmul.f32 %v3034_v18, %v287_v17  ;;  %v296_v38 = vsub.f32 1.0, %v3034_v18  ;;  %v3510_v17 = vld [vmem:[#allocation8 + $0x8] sm:$0xff]  ;;  %v3513_v18 = vld [vmem:[#allocation8] sm:$0xff] }
 0x135   :  { %291 = vrot.lane.b32.xlu0 %v289_v19, %s3252_s4 }
 0x1a7   :  { %v292_v20 = vpop.permute.xlu0 %291 }
 0x1a8   :  { %v294_v21 = vadd.f32 %v292_v20, %v235_v12 }
 0x1aa   :  { %3035 = vtanh.f32 %v294_v21 }
 0x1b7   :  { %v3036_v37 = vpop.eup %3035 }
 0x1b8   :  { %298 = vrot.lane.b32.xlu1 %v3036_v37, %s3254_s0 }
 0x22a   :  { %v299_v39 = vpop.permute.xlu1 %298 }
 0x22b   :  { %v3456_v40 = vmul.f32 %v299_v39, %v296_v38 }
 0x22d   :  { %309 = vrot.lane.b32.xlu1 %v3456_v40, %s3254_s0 }
 0x29f   :  { %v310_v41 = vpop.permute.xlu1 %309 }
 0x2a0   :  { %2766 = vmatmul.mubr.msk.f32.vlgmr.msra.gmra.mxu0 %vm311_vm3, %v310_v41  ;;  %2777 = vmatmul.mubr.msk.f32.vlgmr.msra.gmra.mxu1 %vm311_vm3, %v310_v41 }
 0x2a1   :  { %2798 = vmatprep.mubr.msk.f32.mxu0 %vm3255_vm2, %v3253_v25  ;;  %2780 = vmatpush3.msra.mxu1 %v3383_v26 }
 0x2a2   :  { %2781 = vmatprep.subr.mxu1 %v3253_v25  ;;  %2787 = vmatprep.mubr.msk.f32.mxu1 %vm3255_vm2, %v3253_v25 }
 0x2a3   :  { %2782 = vmatpush3.msra.mxu1 %v3395_v28  ;;  %2791 = vmatpush3.msra.mxu0 %v3500_v13 }
 0x2a4   :  { %2783 = vmatprep.subr.mxu1 %v3253_v25  ;;  %2792 = vmatprep.subr.mxu0 %v3253_v25 }
 0x2a5   :  { %2784 = vmatpush3.msra.mxu1 %v3417_v32  ;;  %2793 = vmatpush3.msra.mxu0 %v3502_v14 }
 0x2a6   :  { %2785 = vmatprep.subr.mxu1 %v3253_v25  ;;  %2794 = vmatprep.subr.mxu0 %v3253_v25 }
 0x2a7   :  { %2786 = vmatpush3.msra.mxu1 %v3436_v35  ;;  %2795 = vmatpush3.msra.mxu0 %v3510_v17 }
 0x2a8   :  { %2801 = vmatprep.subr.mxu1 %v3253_v25  ;;  %2796 = vmatprep.subr.mxu0 %v3253_v25 }
 0x2a9   :  { %2797 = vmatpush3.msra.mxu0 %v3513_v18 }
 0x2aa   :  { %2812 = vmatprep.subr.mxu0 %v3253_v25 }
 0x360   :  { %v380_v48 = vpop.f32.mrf.mxu0  ;;  %v484_v49 = vpop.f32.mrf.mxu1 }
 0x361   :  { %v485_v50 = vadd.f32 %v3344_v4, %v484_v49  ;;  %v381_v56 = vadd.f32 %v3492_v54, %v380_v48 }
 0x362   :  { %v2767_v51 = vpop.f32.mrf.mxu0  ;;  %v2778_v52 = vpop.f32.mrf.mxu1 }
 0x363   :  { %496 = vrot.lane.b32.xlu0 %v485_v50, %s3252_s4  ;;  %v488_v57 = vadd.f32 %v485_v50, %v240_v55  ;;  %v390_v58 = vadd.f32 %v3488_v53, %v381_v56 }
 0x365   :  { %v2554_v59 = vmul.f32 -1.442695, %v488_v57  ;;  %v2552_v60 = vmul.f32 -1.442695, %v390_v58 }
 0x367   :  { %397 = vrot.lane.b32.xlu0 %v3488_v53, %s3252_s4  ;;  %3037 = vpow2.f32 %v2554_v59 }
 0x368   :  { %3039 = vpow2.f32 %v2552_v60 }
 0x374   :  { %v3038_v61 = vpop.eup %3037 }
 0x375   :  { %v492_v62 = vadd.f32 1.0, %v3038_v61  ;;  %v3040_v63 = vpop.eup %3039 }
 0x376   :  { %v394_v0 = vadd.f32 1.0, %v3040_v63 }
 0x377   :  { %3041 = vrcp.f32 %v492_v62  ;;  %v245_v62 = vadd.f32 %v3364_v10, %v3476_v43 }
 0x378   :  { %3043 = vrcp.f32 %v394_v0 }
 0x384   :  { %v3042_v1 = vpop.eup %3041 }
 0x385   :  { %v3044_v5 = vpop.eup %3043 }
 0x386   :  { %v407_v22 = vsub.f32 1.0, %v3044_v5 }
 0x3d5   :  { %v497_v2 = vpop.permute.xlu0 %496 }
 0x3d6   :  { %v499_v3 = vmul.f32 %v3042_v1, %v497_v2 }
 0x3d8   :  { %501 = vrot.lane.b32.xlu1 %v499_v3, %s3252_s4 }
 0x3d9   :  { %v398_v6 = vpop.permute.xlu0 %397 }
 0x3da   :  { %v400_v7 = vmul.f32 %v3044_v5, %v398_v6 }
 0x3dc   :  { %402 = vrot.lane.b32.xlu0 %v400_v7, %s3252_s4 }
 0x44a   :  { %v502_v8 = vpop.permute.xlu1 %501 }
 0x44b   :  { %v504_v9 = vadd.f32 %v502_v8, %v240_v55 }
 0x44d   :  { %3045 = vtanh.f32 %v504_v9 }
 0x44e   :  { %v403_v11 = vpop.permute.xlu0 %402 }
 0x44f   :  { %v405_v12 = vadd.f32 %v403_v11, %v381_v56 }
 0x451   :  { %3047 = vtanh.f32 %v405_v12 }
 0x45a   :  { %v3046_v15 = vpop.eup %3045 }
 0x45b   :  { %507 = vrot.lane.b32.xlu1 %v3046_v15, %s3254_s0 }
 0x45e   :  { %v3048_v16 = vpop.eup %3047 }
 0x45f   :  { %409 = vrot.lane.b32.xlu0 %v3048_v16, %s3254_s0 }
 0x4cd   :  { %v508_v19 = vpop.permute.xlu1 %507 }
 0x4ce   :  { %v510_v20 = vsub.f32 %v3456_v40, %v508_v19 }
 0x4d0   :  { %v511_v21 = vmul.f32 %v3042_v1, %v510_v20 }
 0x4d1   :  { %v410_v23 = vpop.permute.xlu0 %409 }
 0x4d2   :  { %v3519_v24 = vmul.f32 %v410_v23, %v407_v22  ;;  %513 = vrot.lane.b32.xlu1 %v511_v21, %s3256_s23 }
 0x4d4   :  { %414 = vrot.lane.b32.xlu0 %v3519_v24, %s3254_s0 }
 0x544   :  { %v514_v29 = vpop.permute.xlu1 %513 }
 0x545   :  { %v3524_v31 = vadd.f32 %v3046_v15, %v514_v29 }
 0x546   :  { %v415_v34 = vpop.permute.xlu0 %414 }
 0x547   :  { %417 = vst.msk [vmem:[#allocation2] sm:$0xff] %vm311_vm3, %v415_v34  ;;  %518 = vrot.lane.b32.xlu1 %v3524_v31, %s3252_s4  ;;  %2799 = vmatmul.mubr.msk.f32.vlgmr.msra.gmra.mxu0 %vm311_vm3, %v415_v34 }
 0x548   :  { %2813 = vmatpush3.msra.mxu0 %v3383_v26  ;;  %2820 = vmatprep.mubr.msk.f32.mxu0 %vm3255_vm2, %v3253_v25 }
 0x549   :  { %2814 = vmatprep.subr.mxu0 %v3253_v25 }
 0x54a   :  { %2815 = vmatpush3.msra.mxu0 %v3395_v28 }
 0x54b   :  { %2816 = vmatprep.subr.mxu0 %v3253_v25 }
 0x54c   :  { %2817 = vmatpush3.msra.mxu0 %v3417_v32 }
 0x54d   :  { %2818 = vmatprep.subr.mxu0 %v3253_v25 }
 0x54e   :  { %2819 = vmatpush3.msra.mxu0 %v3436_v35 }
 0x54f   :  { %2834 = vmatprep.subr.mxu0 %v3253_v25 }
 0x5b9   :  { %v519_v37 = vpop.permute.xlu1 %518 }
 0x5ba   :  { %2788 = vmatmul.mubr.msk.f32.vlgmr.msra.gmra.mxu1 %vm311_vm3, %v519_v37 }
 0x5bb   :  { %2802 = vmatpush3.msra.mxu1 %v3388_v27  ;;  %2809 = vmatprep.mubr.msk.f32.mxu1 %vm3255_vm2, %v3253_v25 }
 0x5bc   :  { %2803 = vmatprep.subr.mxu1 %v3253_v25 }
 0x5bd   :  { %2804 = vmatpush3.msra.mxu1 %v3405_v30 }
 0x5be   :  { %2805 = vmatprep.subr.mxu1 %v3253_v25 }
 0x5bf   :  { %2806 = vmatpush3.msra.mxu1 %v3424_v33 }
 0x5c0   :  { %2807 = vmatprep.subr.mxu1 %v3253_v25 }
 0x5c1   :  { %2808 = vmatpush3.msra.mxu1 %v3443_v36 }
 0x5c2   :  { %2810 = vmatmul.mubr.msk.f32.vlgmr.msra.gmra.mxu1 %vm311_vm3, %v519_v37  ;;  %2823 = vmatprep.subr.mxu1 %v3253_v25 }
 0x5c3   :  { %2824 = vmatpush3.msra.mxu1 %v3500_v13  ;;  %2831 = vmatprep.mubr.msk.f32.mxu1 %vm3255_vm2, %v3253_v25 }
 0x5c4   :  { %2825 = vmatprep.subr.mxu1 %v3253_v25 }
 0x5c5   :  { %2826 = vmatpush3.msra.mxu1 %v3502_v14 }
 0x5c6   :  { %2827 = vmatprep.subr.mxu1 %v3253_v25 }
 0x5c7   :  { %2828 = vmatpush3.msra.mxu1 %v3510_v17 }
 0x5c8   :  { %2829 = vmatprep.subr.mxu1 %v3253_v25 }
 0x5c9   :  { %2830 = vmatpush3.msra.mxu1 %v3513_v18 }
 0x5ca   :  { %2845 = vmatprep.subr.mxu1 %v3253_v25 }
 0x607   :  { %v660_v38 = vpop.f32.mrf.mxu0 }
 0x608   :  { %v661_v39 = vadd.f32 %v3488_v53, %v660_v38 }
 0x609   :  { %v2800_v40 = vpop.f32.mrf.mxu0 }
 0x60a   :  { %672 = vrot.lane.b32.xlu0 %v661_v39, %s3252_s4 }
 0x67a   :  { %v588_v41 = vpop.f32.mrf.mxu1 }
 0x67b   :  { %v589_v48 = vadd.f32 %v3492_v54, %v588_v41 }
 0x67c   :  { %v2789_v49 = vpop.f32.mrf.mxu1  ;;  %v673_v60 = vpop.permute.xlu0 %672 }
 0x67d   :  { %v664_v50 = vadd.f32 %v661_v39, %v589_v48 }
 0x67f   :  { %v2557_v51 = vmul.f32 -1.442695, %v664_v50 }
 0x681   :  { %3049 = vpow2.f32 %v2557_v51 }
 0x682   :  { %v764_v52 = vpop.f32.mrf.mxu1 }
 0x683   :  { %v765_v55 = vadd.f32 %v3344_v4, %v764_v52 }
 0x684   :  { %v2811_v56 = vpop.f32.mrf.mxu1 }
 0x685   :  { %776 = vrot.lane.b32.xlu1 %v765_v55, %s3252_s4  ;;  %v768_v63 = vadd.f32 %v765_v55, %v245_v62 }
 0x687   :  { %v2559_v0 = vmul.f32 -1.442695, %v768_v63 }
 0x68e   :  { %v3050_v57 = vpop.eup %3049 }
 0x68f   :  { %v668_v58 = vadd.f32 1.0, %v3050_v57 }
 0x691   :  { %3051 = vrcp.f32 %v668_v58 }
 0x692   :  { %3053 = vpow2.f32 %v2559_v0 }
 0x69e   :  { %v3052_v59 = vpop.eup %3051 }
 0x69f   :  { %v675_v61 = vmul.f32 %v3052_v59, %v673_v60  ;;  %v3054_v1 = vpop.eup %3053 }
 0x6a0   :  { %v772_v2 = vadd.f32 1.0, %v3054_v1 }
 0x6a1   :  { %677 = vrot.lane.b32.xlu0 %v675_v61, %s3252_s4 }
 0x6a2   :  { %3055 = vrcp.f32 %v772_v2 }
 0x6af   :  { %v3056_v3 = vpop.eup %3055 }
 0x6f7   :  { %v777_v5 = vpop.permute.xlu1 %776 }
 0x6f8   :  { %v779_v6 = vmul.f32 %v3056_v3, %v777_v5 }
 0x6fa   :  { %781 = vrot.lane.b32.xlu1 %v779_v6, %s3252_s4 }
 0x713   :  { %v678_v7 = vpop.permute.xlu0 %677 }
 0x714   :  { %v680_v8 = vadd.f32 %v678_v7, %v589_v48 }
 0x716   :  { %3057 = vtanh.f32 %v680_v8 }
 0x723   :  { %v3058_v9 = vpop.eup %3057 }
 0x724   :  { %683 = vrot.lane.b32.xlu0 %v3058_v9, %s3254_s0 }
 0x76c   :  { %v782_v11 = vpop.permute.xlu1 %781 }
 0x76d   :  { %v784_v12 = vadd.f32 %v782_v11, %v245_v62  ;;  %v250_v62 = vadd.f32 %v3474_v42, %v3364_v10 }
 0x76f   :  { %3059 = vtanh.f32 %v784_v12 }
 0x77c   :  { %v3060_v43 = vpop.eup %3059 }
 0x77d   :  { %v786_v15 = vsub.f32 %v3524_v31, %v3060_v43 }
 0x77f   :  { %788 = vrot.lane.b32.xlu1 %v786_v15, %s3254_s0 }
 0x796   :  { %v684_v16 = vpop.permute.xlu0 %683 }
 0x797   :  { %v686_v19 = vsub.f32 %v3519_v24, %v684_v16 }
 0x799   :  { %v687_v20 = vmul.f32 %v3052_v59, %v686_v19 }
 0x79b   :  { %689 = vrot.lane.b32.xlu0 %v687_v20, %s3256_s23 }
 0x7f1   :  { %v789_v21 = vpop.permute.xlu1 %788 }
 0x7f2   :  { %v791_v22 = vmul.f32 %v3056_v3, %v789_v21 }
 0x7f4   :  { %793 = vrot.lane.b32.xlu1 %v791_v22, %s3256_s23 }
 0x80d   :  { %v690_v23 = vpop.permute.xlu0 %689 }
 0x80e   :  { %v3577_v29 = vadd.f32 %v3058_v9, %v690_v23 }
 0x810   :  { %694 = vrot.lane.b32.xlu0 %v3577_v29, %s3252_s4 }
 0x866   :  { %v794_v34 = vpop.permute.xlu1 %793 }
 0x867   :  { %v3581_v31 = vadd.f32 %v3060_v43, %v794_v34 }
 0x869   :  { %798 = vrot.lane.b32.xlu1 %v3581_v31, %s3252_s4 }
 0x882   :  { %v695_v24 = vpop.permute.xlu0 %694 }
 0x883   :  { %697 = vst.msk [vmem:[#allocation2 + $0x8] sm:$0xff] %vm311_vm3, %v695_v24  ;;  %2832 = vmatmul.mubr.msk.f32.vlgmr.msra.gmra.mxu1 %vm311_vm3, %v695_v24 }
 0x884   :  { %2846 = vmatpush3.msra.mxu1 %v3383_v26  ;;  %2853 = vmatprep.mubr.msk.f32.mxu1 %vm3255_vm2, %v3253_v25 }
 0x885   :  { %2847 = vmatprep.subr.mxu1 %v3253_v25 }
 0x886   :  { %2848 = vmatpush3.msra.mxu1 %v3395_v28 }
 0x887   :  { %2849 = vmatprep.subr.mxu1 %v3253_v25 }
 0x888   :  { %2850 = vmatpush3.msra.mxu1 %v3417_v32 }
 0x889   :  { %2851 = vmatprep.subr.mxu1 %v3253_v25 }
 0x88a   :  { %2852 = vmatpush3.msra.mxu1 %v3436_v35 }
 0x88b   :  { %2867 = vmatprep.subr.mxu1 %v3253_v25 }
 0x8db   :  { %v799_v37 = vpop.permute.xlu1 %798 }
 0x8dc   :  { %2821 = vmatmul.mubr.msk.f32.vlgmr.msra.gmra.mxu0 %vm311_vm3, %v799_v37 }
 0x8dd   :  { %2835 = vmatpush3.msra.mxu0 %v3388_v27  ;;  %2842 = vmatprep.mubr.msk.f32.mxu0 %vm3255_vm2, %v3253_v25 }
 0x8de   :  { %2836 = vmatprep.subr.mxu0 %v3253_v25 }
 0x8df   :  { %2837 = vmatpush3.msra.mxu0 %v3405_v30 }
 0x8e0   :  { %2838 = vmatprep.subr.mxu0 %v3253_v25 }
 0x8e1   :  { %2839 = vmatpush3.msra.mxu0 %v3424_v33 }
 0x8e2   :  { %2840 = vmatprep.subr.mxu0 %v3253_v25 }
 0x8e3   :  { %2841 = vmatpush3.msra.mxu0 %v3443_v36 }
 0x8e4   :  { %2843 = vmatmul.mubr.msk.f32.vlgmr.msra.gmra.mxu0 %vm311_vm3, %v799_v37  ;;  %2856 = vmatprep.subr.mxu0 %v3253_v25 }
 0x8e5   :  { %2857 = vmatpush3.msra.mxu0 %v3500_v13  ;;  %2864 = vmatprep.mubr.msk.f32.mxu0 %vm3255_vm2, %v3253_v25 }
 0x8e6   :  { %2858 = vmatprep.subr.mxu0 %v3253_v25 }
 0x8e7   :  { %2859 = vmatpush3.msra.mxu0 %v3502_v14 }
 0x8e8   :  { %2860 = vmatprep.subr.mxu0 %v3253_v25 }
 0x8e9   :  { %2861 = vmatpush3.msra.mxu0 %v3510_v17 }
 0x8ea   :  { %2862 = vmatprep.subr.mxu0 %v3253_v25 }
 0x8eb   :  { %2863 = vmatpush3.msra.mxu0 %v3513_v18 }
 0x8ec   :  { %2878 = vmatprep.subr.mxu0 %v3253_v25 }
 0x943   :  { %v940_v38 = vpop.f32.mrf.mxu1 }
 0x944   :  { %v941_v39 = vadd.f32 %v3488_v53, %v940_v38 }
 0x945   :  { %v2833_v40 = vpop.f32.mrf.mxu1 }
 0x946   :  { %952 = vrot.lane.b32.xlu0 %v941_v39, %s3252_s4 }
 0x99c   :  { %v868_v41 = vpop.f32.mrf.mxu0 }
 0x99d   :  { %v869_v48 = vadd.f32 %v3492_v54, %v868_v41 }
 0x99e   :  { %v2822_v49 = vpop.f32.mrf.mxu0 }
 0x99f   :  { %v944_v50 = vadd.f32 %v941_v39, %v869_v48 }
 0x9a1   :  { %v2562_v51 = vmul.f32 -1.442695, %v944_v50 }
 0x9a3   :  { %3061 = vpow2.f32 %v2562_v51 }
 0x9a4   :  { %v1044_v52 = vpop.f32.mrf.mxu0 }
 0x9a5   :  { %v1045_v55 = vadd.f32 %v3344_v4, %v1044_v52 }
 0x9a6   :  { %v2844_v56 = vpop.f32.mrf.mxu0 }
 0x9a7   :  { %1056 = vrot.lane.b32.xlu1 %v1045_v55, %s3252_s4  ;;  %v1048_v63 = vadd.f32 %v1045_v55, %v250_v62 }
 0x9a9   :  { %v2564_v0 = vmul.f32 -1.442695, %v1048_v63 }
 0x9b0   :  { %v3062_v57 = vpop.eup %3061 }
 0x9b1   :  { %v948_v58 = vadd.f32 1.0, %v3062_v57 }
 0x9b3   :  { %3063 = vrcp.f32 %v948_v58 }
 0x9b4   :  { %3065 = vpow2.f32 %v2564_v0 }
 0x9b8   :  { %v953_v60 = vpop.permute.xlu0 %952 }
 0x9c0   :  { %v3064_v59 = vpop.eup %3063 }
 0x9c1   :  { %v955_v61 = vmul.f32 %v3064_v59, %v953_v60  ;;  %v3066_v1 = vpop.eup %3065 }
 0x9c2   :  { %v1052_v2 = vadd.f32 1.0, %v3066_v1 }
 0x9c3   :  { %957 = vrot.lane.b32.xlu0 %v955_v61, %s3252_s4  ;;  %v255_v61 = vadd.f32 %v3364_v10, %v3480_v45 }
 0x9c4   :  { %3067 = vrcp.f32 %v1052_v2 }
 0x9d1   :  { %v3068_v3 = vpop.eup %3067 }
 0xa19   :  { %v1057_v5 = vpop.permute.xlu1 %1056 }
 0xa1a   :  { %v1059_v6 = vmul.f32 %v3068_v3, %v1057_v5 }
 0xa1c   :  { %1061 = vrot.lane.b32.xlu1 %v1059_v6, %s3252_s4 }
 0xa35   :  { %v958_v7 = vpop.permute.xlu0 %957 }
 0xa36   :  { %v960_v8 = vadd.f32 %v958_v7, %v869_v48 }
 0xa38   :  { %3069 = vtanh.f32 %v960_v8 }
 0xa45   :  { %v3070_v9 = vpop.eup %3069 }
 0xa46   :  { %v962_v11 = vsub.f32 %v3577_v29, %v3070_v9 }
 0xa48   :  { %964 = vrot.lane.b32.xlu0 %v962_v11, %s3254_s0 }
 0xa8e   :  { %v1062_v42 = vpop.permute.xlu1 %1061 }
 0xa8f   :  { %v1064_v12 = vadd.f32 %v1062_v42, %v250_v62 }
 0xa91   :  { %3071 = vtanh.f32 %v1064_v12 }
 0xa9e   :  { %v3072_v43 = vpop.eup %3071 }
 0xa9f   :  { %v1066_v15 = vsub.f32 %v3581_v31, %v3072_v43 }
 0xaa1   :  { %1068 = vrot.lane.b32.xlu1 %v1066_v15, %s3254_s0 }
 0xaba   :  { %v965_v16 = vpop.permute.xlu0 %964 }
 0xabb   :  { %v967_v19 = vmul.f32 %v3064_v59, %v965_v16 }
 0xabd   :  { %969 = vrot.lane.b32.xlu0 %v967_v19, %s3256_s23 }
 0xb13   :  { %v1069_v20 = vpop.permute.xlu1 %1068 }
 0xb14   :  { %v1071_v21 = vmul.f32 %v3068_v3, %v1069_v20 }
 0xb16   :  { %1073 = vrot.lane.b32.xlu1 %v1071_v21, %s3256_s23 }
 0xb2f   :  { %v970_v22 = vpop.permute.xlu0 %969 }
 0xb30   :  { %v3634_v23 = vadd.f32 %v3070_v9, %v970_v22 }
 0xb32   :  { %974 = vrot.lane.b32.xlu0 %v3634_v23, %s3252_s4 }
 0xb88   :  { %v1074_v29 = vpop.permute.xlu1 %1073 }
 0xb89   :  { %v3638_v34 = vadd.f32 %v3072_v43, %v1074_v29 }
 0xb8b   :  { %1078 = vrot.lane.b32.xlu1 %v3638_v34, %s3252_s4 }
 0xba4   :  { %v975_v31 = vpop.permute.xlu0 %974 }
 0xba5   :  { %977 = vst.msk [vmem:[#allocation2 + $0x10] sm:$0xff] %vm311_vm3, %v975_v31  ;;  %2865 = vmatmul.mubr.msk.f32.vlgmr.msra.gmra.mxu0 %vm311_vm3, %v975_v31 }
 0xba6   :  { %2879 = vmatpush3.msra.mxu0 %v3383_v26  ;;  %2886 = vmatprep.mubr.msk.f32.mxu0 %vm3255_vm2, %v3253_v25 }
 0xba7   :  { %2880 = vmatprep.subr.mxu0 %v3253_v25 }
 0xba8   :  { %2881 = vmatpush3.msra.mxu0 %v3395_v28 }
 0xba9   :  { %2882 = vmatprep.subr.mxu0 %v3253_v25 }
 0xbaa   :  { %2883 = vmatpush3.msra.mxu0 %v3417_v32 }
 0xbab   :  { %2884 = vmatprep.subr.mxu0 %v3253_v25 }
 0xbac   :  { %2885 = vmatpush3.msra.mxu0 %v3436_v35 }
 0xbad   :  { %2900 = vmatprep.subr.mxu0 %v3253_v25 }
 0xbfd   :  { %v1079_v24 = vpop.permute.xlu1 %1078 }
 0xbfe   :  { %2854 = vmatmul.mubr.msk.f32.vlgmr.msra.gmra.mxu1 %vm311_vm3, %v1079_v24 }
 0xbff   :  { %2868 = vmatpush3.msra.mxu1 %v3388_v27  ;;  %2875 = vmatprep.mubr.msk.f32.mxu1 %vm3255_vm2, %v3253_v25 }
 0xc00   :  { %2869 = vmatprep.subr.mxu1 %v3253_v25 }
 0xc01   :  { %2870 = vmatpush3.msra.mxu1 %v3405_v30 }
 0xc02   :  { %2871 = vmatprep.subr.mxu1 %v3253_v25 }
 0xc03   :  { %2872 = vmatpush3.msra.mxu1 %v3424_v33 }
 0xc04   :  { %2873 = vmatprep.subr.mxu1 %v3253_v25 }
 0xc05   :  { %2874 = vmatpush3.msra.mxu1 %v3443_v36 }
 0xc06   :  { %2876 = vmatmul.mubr.msk.f32.vlgmr.msra.gmra.mxu1 %vm311_vm3, %v1079_v24  ;;  %2889 = vmatprep.subr.mxu1 %v3253_v25 }
 0xc07   :  { %2890 = vmatpush3.msra.mxu1 %v3500_v13  ;;  %2897 = vmatprep.mubr.msk.f32.mxu1 %vm3255_vm2, %v3253_v25 }
 0xc08   :  { %2891 = vmatprep.subr.mxu1 %v3253_v25 }
 0xc09   :  { %2892 = vmatpush3.msra.mxu1 %v3502_v14 }
 0xc0a   :  { %2893 = vmatprep.subr.mxu1 %v3253_v25 }
 0xc0b   :  { %2894 = vmatpush3.msra.mxu1 %v3510_v17 }
 0xc0c   :  { %2895 = vmatprep.subr.mxu1 %v3253_v25 }
 0xc0d   :  { %2896 = vmatpush3.msra.mxu1 %v3513_v18 }
 0xc0e   :  { %2911 = vmatprep.subr.mxu1 %v3253_v25 }
 0xc65   :  { %v1220_v37 = vpop.f32.mrf.mxu0 }
 0xc66   :  { %v1221_v38 = vadd.f32 %v3488_v53, %v1220_v37 }
 0xc67   :  { %v2866_v39 = vpop.f32.mrf.mxu0 }
 0xc68   :  { %1232 = vrot.lane.b32.xlu1 %v1221_v38, %s3252_s4 }
 0xcbe   :  { %v1148_v40 = vpop.f32.mrf.mxu1 }
 0xcbf   :  { %v1149_v41 = vadd.f32 %v3492_v54, %v1148_v40 }
 0xcc0   :  { %v2855_v48 = vpop.f32.mrf.mxu1 }
 0xcc1   :  { %v1224_v49 = vadd.f32 %v1221_v38, %v1149_v41 }
 0xcc3   :  { %v2567_v50 = vmul.f32 -1.442695, %v1224_v49 }
 0xcc5   :  { %3073 = vpow2.f32 %v2567_v50 }
 0xcc6   :  { %v1324_v51 = vpop.f32.mrf.mxu1 }
 0xcc7   :  { %v1325_v52 = vadd.f32 %v3344_v4, %v1324_v51 }
 0xcc8   :  { %v2877_v55 = vpop.f32.mrf.mxu1 }
 0xcc9   :  { %1336 = vrot.lane.b32.xlu0 %v1325_v52, %s3252_s4  ;;  %v1328_v62 = vadd.f32 %v1325_v52, %v255_v61 }
 0xccb   :  { %v2569_v63 = vmul.f32 -1.442695, %v1328_v62 }
 0xcd2   :  { %v3074_v56 = vpop.eup %3073 }
 0xcd3   :  { %v1228_v57 = vadd.f32 1.0, %v3074_v56 }
 0xcd5   :  { %3075 = vrcp.f32 %v1228_v57 }
 0xcd6   :  { %3077 = vpow2.f32 %v2569_v63 }
 0xcda   :  { %v1233_v59 = vpop.permute.xlu1 %1232 }
 0xce2   :  { %v3076_v58 = vpop.eup %3075 }
 0xce3   :  { %v1235_v60 = vmul.f32 %v3076_v58, %v1233_v59  ;;  %v3078_v0 = vpop.eup %3077  ;;  %v260_v59 = vadd.f32 %v3478_v44, %v3364_v10 }
 0xce4   :  { %v1332_v1 = vadd.f32 1.0, %v3078_v0 }
 0xce5   :  { %1237 = vrot.lane.b32.xlu1 %v1235_v60, %s3252_s4 }
 0xce6   :  { %3079 = vrcp.f32 %v1332_v1 }
 0xcf3   :  { %v3080_v2 = vpop.eup %3079 }
 0xd3b   :  { %v1337_v3 = vpop.permute.xlu0 %1336 }
 0xd3c   :  { %v1339_v5 = vmul.f32 %v3080_v2, %v1337_v3 }
 0xd3e   :  { %1341 = vrot.lane.b32.xlu0 %v1339_v5, %s3252_s4 }
 0xd57   :  { %v1238_v6 = vpop.permute.xlu1 %1237 }
 0xd58   :  { %v1240_v7 = vadd.f32 %v1238_v6, %v1149_v41 }
 0xd5a   :  { %3081 = vtanh.f32 %v1240_v7 }
 0xd67   :  { %v3082_v8 = vpop.eup %3081 }
 0xd68   :  { %v1242_v9 = vsub.f32 %v3634_v23, %v3082_v8 }
 0xd6a   :  { %1244 = vrot.lane.b32.xlu1 %v1242_v9, %s3254_s0 }
 0xdb0   :  { %v1342_v45 = vpop.permute.xlu0 %1341 }
 0xdb1   :  { %v1344_v11 = vadd.f32 %v1342_v45, %v255_v61 }
 0xdb3   :  { %3083 = vtanh.f32 %v1344_v11 }
 0xdc0   :  { %v3084_v42 = vpop.eup %3083 }
 0xdc1   :  { %v1346_v12 = vsub.f32 %v3638_v34, %v3084_v42 }
 0xdc3   :  { %1348 = vrot.lane.b32.xlu0 %v1346_v12, %s3254_s0 }
 0xddc   :  { %v1245_v43 = vpop.permute.xlu1 %1244 }
 0xddd   :  { %v1247_v15 = vmul.f32 %v3076_v58, %v1245_v43 }
 0xddf   :  { %1249 = vrot.lane.b32.xlu1 %v1247_v15, %s3256_s23 }
 0xe35   :  { %v1349_v16 = vpop.permute.xlu0 %1348 }
 0xe36   :  { %v1351_v19 = vmul.f32 %v3080_v2, %v1349_v16 }
 0xe38   :  { %1353 = vrot.lane.b32.xlu0 %v1351_v19, %s3256_s23 }
 0xe51   :  { %v1250_v20 = vpop.permute.xlu1 %1249 }
 0xe52   :  { %v3691_v21 = vadd.f32 %v3082_v8, %v1250_v20 }
 0xe54   :  { %1254 = vrot.lane.b32.xlu1 %v3691_v21, %s3252_s4 }
 0xeaa   :  { %v1354_v22 = vpop.permute.xlu0 %1353 }
 0xeab   :  { %v3695_v23 = vadd.f32 %v3084_v42, %v1354_v22  ;;  %v3793_v22 = vld [vmem:[#allocation5] ss:$0 sm:$0xff] }
 0xead   :  { %1358 = vrot.lane.b32.xlu0 %v3695_v23, %s3252_s4 }
 0xec6   :  { %v1255_v29 = vpop.permute.xlu1 %1254 }
 0xec7   :  { %1257 = vst.msk [vmem:[#allocation2 + $0x18] sm:$0xff] %vm311_vm3, %v1255_v29  ;;  %2898 = vmatmul.mubr.msk.f32.vlgmr.msra.gmra.mxu1 %vm311_vm3, %v1255_v29 }
 0xec8   :  { %2912 = vmatpush3.msra.mxu1 %v3383_v26  ;;  %2919 = vmatprep.mubr.msk.f32.mxu1 %vm3255_vm2, %v3253_v25 }
 0xec9   :  { %2913 = vmatprep.subr.mxu1 %v3253_v25 }
 0xeca   :  { %2914 = vmatpush3.msra.mxu1 %v3395_v28 }
 0xecb   :  { %2915 = vmatprep.subr.mxu1 %v3253_v25 }
 0xecc   :  { %2916 = vmatpush3.msra.mxu1 %v3417_v32 }
 0xecd   :  { %2917 = vmatprep.subr.mxu1 %v3253_v25 }
 0xece   :  { %2918 = vmatpush3.msra.mxu1 %v3436_v35 }
 0xecf   :  { %2933 = vmatprep.subr.mxu1 %v3253_v25 }
 0xf1f   :  { %v1359_v34 = vpop.permute.xlu0 %1358 }
 0xf20   :  { %2887 = vmatmul.mubr.msk.f32.vlgmr.msra.gmra.mxu0 %vm311_vm3, %v1359_v34 }
 0xf21   :  { %2901 = vmatpush3.msra.mxu0 %v3388_v27  ;;  %2908 = vmatprep.mubr.msk.f32.mxu0 %vm3255_vm2, %v3253_v25 }
 0xf22   :  { %2902 = vmatprep.subr.mxu0 %v3253_v25 }
 0xf23   :  { %2903 = vmatpush3.msra.mxu0 %v3405_v30 }
 0xf24   :  { %2904 = vmatprep.subr.mxu0 %v3253_v25 }
 0xf25   :  { %2905 = vmatpush3.msra.mxu0 %v3424_v33 }
 0xf26   :  { %2906 = vmatprep.subr.mxu0 %v3253_v25 }
 0xf27   :  { %2907 = vmatpush3.msra.mxu0 %v3443_v36 }
 0xf28   :  { %2909 = vmatmul.mubr.msk.f32.vlgmr.msra.gmra.mxu0 %vm311_vm3, %v1359_v34  ;;  %2922 = vmatprep.subr.mxu0 %v3253_v25 }
 0xf29   :  { %2923 = vmatpush3.msra.mxu0 %v3500_v13  ;;  %2930 = vmatprep.mubr.msk.f32.mxu0 %vm3255_vm2, %v3253_v25 }
 0xf2a   :  { %2924 = vmatprep.subr.mxu0 %v3253_v25 }
 0xf2b   :  { %2925 = vmatpush3.msra.mxu0 %v3502_v14 }
 0xf2c   :  { %2926 = vmatprep.subr.mxu0 %v3253_v25 }
 0xf2d   :  { %2927 = vmatpush3.msra.mxu0 %v3510_v17 }
 0xf2e   :  { %2928 = vmatprep.subr.mxu0 %v3253_v25 }
 0xf2f   :  { %2929 = vmatpush3.msra.mxu0 %v3513_v18 }
 0xf30   :  { %2944 = vmatprep.subr.mxu0 %v3253_v25 }
 0xf87   :  { %v1500_v31 = vpop.f32.mrf.mxu1 }
 0xf88   :  { %v1501_v24 = vadd.f32 %v3488_v53, %v1500_v31 }
 0xf89   :  { %v2899_v37 = vpop.f32.mrf.mxu1 }
 0xf8a   :  { %1512 = vrot.lane.b32.xlu1 %v1501_v24, %s3252_s4 }
 0xfe0   :  { %v1428_v38 = vpop.f32.mrf.mxu0 }
 0xfe1   :  { %v1429_v39 = vadd.f32 %v3492_v54, %v1428_v38 }
 0xfe2   :  { %v2888_v40 = vpop.f32.mrf.mxu0 }
 0xfe3   :  { %v1504_v41 = vadd.f32 %v1501_v24, %v1429_v39 }
 0xfe5   :  { %v2572_v48 = vmul.f32 -1.442695, %v1504_v41 }
 0xfe7   :  { %3085 = vpow2.f32 %v2572_v48 }
 0xfe8   :  { %v1604_v49 = vpop.f32.mrf.mxu0 }
 0xfe9   :  { %v1605_v50 = vadd.f32 %v3344_v4, %v1604_v49 }
 0xfea   :  { %v2910_v51 = vpop.f32.mrf.mxu0 }
 0xfeb   :  { %1616 = vrot.lane.b32.xlu0 %v1605_v50, %s3252_s4  ;;  %v1608_v60 = vadd.f32 %v1605_v50, %v260_v59 }
 0xfed   :  { %v2574_v61 = vmul.f32 -1.442695, %v1608_v60 }
 0xff4   :  { %v3086_v52 = vpop.eup %3085 }
 0xff5   :  { %v1508_v55 = vadd.f32 1.0, %v3086_v52 }
 0xff7   :  { %3087 = vrcp.f32 %v1508_v55 }
 0xff8   :  { %3089 = vpow2.f32 %v2574_v61 }
 0xffc   :  { %v1513_v57 = vpop.permute.xlu1 %1512 }
0x1004   :  { %v3088_v56 = vpop.eup %3087 }
0x1005   :  { %v1515_v58 = vmul.f32 %v3088_v56, %v1513_v57  ;;  %v3090_v62 = vpop.eup %3089 }
0x1006   :  { %v1612_v63 = vadd.f32 1.0, %v3090_v62 }
0x1007   :  { %1517 = vrot.lane.b32.xlu1 %v1515_v58, %s3252_s4 }
0x1008   :  { %3091 = vrcp.f32 %v1612_v63 }
0x1015   :  { %v3092_v4 = vpop.eup %3091 }
0x105d   :  { %v1617_v0 = vpop.permute.xlu0 %1616 }
0x105e   :  { %v1619_v1 = vmul.f32 %v3092_v4, %v1617_v0 }
0x1060   :  { %1621 = vrot.lane.b32.xlu0 %v1619_v1, %s3252_s4 }
0x1079   :  { %v1518_v2 = vpop.permute.xlu1 %1517 }
0x107a   :  { %v1520_v3 = vadd.f32 %v1518_v2, %v1429_v39 }
0x107c   :  { %3093 = vtanh.f32 %v1520_v3 }
0x1089   :  { %v3094_v5 = vpop.eup %3093 }
0x108a   :  { %v1522_v6 = vsub.f32 %v3691_v21, %v3094_v5 }
0x108c   :  { %1524 = vrot.lane.b32.xlu1 %v1522_v6, %s3254_s0  ;;  %v3129_v6 = vld [vmem:[%s3961_s5 + $0x18] sm:$0xff] }
0x10d2   :  { %v1622_v10 = vpop.permute.xlu0 %1621 }
0x10d3   :  { %v1624_v44 = vadd.f32 %v1622_v10, %v260_v59  ;;  %v3130_v10 = vld [vmem:[%s3961_s5 + $0x10] sm:$0xff] }
0x10d5   :  { %3095 = vtanh.f32 %v1624_v44  ;;  %v3131_v44 = vld [vmem:[%s3961_s5 + $0x8] sm:$0xff] }
0x10e2   :  { %v3096_v7 = vpop.eup %3095 }
0x10e3   :  { %v1626_v8 = vsub.f32 %v3695_v23, %v3096_v7 }
0x10e5   :  { %1628 = vrot.lane.b32.xlu0 %v1626_v8, %s3254_s0 }
0x10fe   :  { %v1525_v9 = vpop.permute.xlu1 %1524 }
0x10ff   :  { %v1527_v45 = vmul.f32 %v3088_v56, %v1525_v9  ;;  %v3133_v9 = vld [vmem:[%s3959_s3 + $0x18] sm:$0xff] }
0x1101   :  { %1529 = vrot.lane.b32.xlu1 %v1527_v45, %s3256_s23  ;;  %v3134_v45 = vld [vmem:[%s3959_s3 + $0x10] sm:$0xff] }
0x1157   :  { %v1629_v11 = vpop.permute.xlu0 %1628 }
0x1158   :  { %v1631_v42 = vmul.f32 %v3092_v4, %v1629_v11  ;;  %v3135_v11 = vld [vmem:[%s3959_s3 + $0x8] sm:$0xff] }
0x115a   :  { %1633 = vrot.lane.b32.xlu0 %v1631_v42, %s3256_s23  ;;  %v3136_v42 = vld [vmem:[%s3959_s3] sm:$0xff] }
0x1173   :  { %v1530_v12 = vpop.permute.xlu1 %1529 }
0x1174   :  { %v3748_v43 = vadd.f32 %v3094_v5, %v1530_v12 }
0x1176   :  { %1534 = vrot.lane.b32.xlu1 %v3748_v43, %s3252_s4 }
0x11cc   :  { %v1634_v15 = vpop.permute.xlu0 %1633 }
0x11cd   :  { %v3752_v16 = vadd.f32 %v3096_v7, %v1634_v15  ;;  %v3132_v7 = vld [vmem:[%s3961_s5] sm:$0xff] }
0x11cf   :  { %1638 = vrot.lane.b32.xlu0 %v3752_v16, %s3252_s4 }
0x11e8   :  { %v1535_v19 = vpop.permute.xlu1 %1534 }
0x11e9   :  { %1537 = vst.msk [vmem:[#allocation2 + $0x20] sm:$0xff] %vm311_vm3, %v1535_v19  ;;  %2931 = vmatmul.mubr.msk.f32.vlgmr.msra.gmra.mxu0 %vm311_vm3, %v1535_v19  ;;  %v3869_v19 = vld [vmem:[#allocation7] ss:$0 sm:$0xff] }
0x11ea   :  { %2945 = vmatpush3.msra.mxu0 %v3383_v26  ;;  %2952 = vmatprep.mubr.msk.f32.mxu0 %vm3255_vm2, %v3253_v25 }
0x11eb   :  { %2946 = vmatprep.subr.mxu0 %v3253_v25 }
0x11ec   :  { %2947 = vmatpush3.msra.mxu0 %v3395_v28 }
0x11ed   :  { %2948 = vmatprep.subr.mxu0 %v3253_v25 }
0x11ee   :  { %2949 = vmatpush3.msra.mxu0 %v3417_v32 }
0x11ef   :  { %2950 = vmatprep.subr.mxu0 %v3253_v25 }
0x11f0   :  { %2951 = vmatpush3.msra.mxu0 %v3436_v35 }
0x11f1   :  { %2966 = vmatprep.subr.mxu0 %v3253_v25 }
0x1241   :  { %v1639_v20 = vpop.permute.xlu0 %1638 }
0x1242   :  { %2920 = vmatmul.mubr.msk.f32.vlgmr.msra.gmra.mxu1 %vm311_vm3, %v1639_v20 }
0x1243   :  { %2934 = vmatpush3.msra.mxu1 %v3388_v27  ;;  %2941 = vmatprep.mubr.msk.f32.mxu1 %vm3255_vm2, %v3253_v25 }
0x1244   :  { %2935 = vmatprep.subr.mxu1 %v3253_v25 }
0x1245   :  { %2936 = vmatpush3.msra.mxu1 %v3405_v30 }
0x1246   :  { %2937 = vmatprep.subr.mxu1 %v3253_v25 }
0x1247   :  { %2938 = vmatpush3.msra.mxu1 %v3424_v33 }
0x1248   :  { %2939 = vmatprep.subr.mxu1 %v3253_v25 }
0x1249   :  { %2940 = vmatpush3.msra.mxu1 %v3443_v36 }
0x124a   :  { %2942 = vmatmul.mubr.msk.f32.vlgmr.msra.gmra.mxu1 %vm311_vm3, %v1639_v20  ;;  %2955 = vmatprep.subr.mxu1 %v3253_v25 }
0x124b   :  { %2956 = vmatpush3.msra.mxu1 %v3500_v13  ;;  %2963 = vmatprep.mubr.msk.f32.mxu1 %vm3255_vm2, %v3253_v25 }
0x124c   :  { %2957 = vmatprep.subr.mxu1 %v3253_v25 }
0x124d   :  { %2958 = vmatpush3.msra.mxu1 %v3502_v14 }
0x124e   :  { %2959 = vmatprep.subr.mxu1 %v3253_v25 }
0x124f   :  { %2960 = vmatpush3.msra.mxu1 %v3510_v17 }
0x1250   :  { %2961 = vmatprep.subr.mxu1 %v3253_v25 }
0x1251   :  { %2962 = vmatpush3.msra.mxu1 %v3513_v18 }
0x1252   :  { %2977 = vmatprep.subr.mxu1 %v3253_v25 }
0x12a9   :  { %v1780_v26 = vpop.f32.mrf.mxu0 }
0x12aa   :  { %v1781_v27 = vadd.f32 %v3488_v53, %v1780_v26 }
0x12ab   :  { %v2932_v28 = vpop.f32.mrf.mxu0 }
0x12ac   :  { %1792 = vrot.lane.b32.xlu1 %v1781_v27, %s3252_s4 }
0x1302   :  { %v1708_v30 = vpop.f32.mrf.mxu1 }
0x1303   :  { %v1709_v32 = vadd.f32 %v3492_v54, %v1708_v30  ;;  %v3798_v54 = vld [vmem:[#allocation3] ss:$0 sm:$0xff] }
0x1304   :  { %v2921_v33 = vpop.f32.mrf.mxu1  ;;  %v265_v38 = vadd.f32 %v3798_v54, %v3484_v47 }
0x1305   :  { %v1784_v35 = vadd.f32 %v1781_v27, %v1709_v32 }
0x1307   :  { %v2577_v36 = vmul.f32 -1.442695, %v1784_v35 }
0x1309   :  { %3097 = vpow2.f32 %v2577_v36  ;;  %v270_v36 = vadd.f32 %v3798_v54, %v3482_v46 }
0x130a   :  { %v1884_v21 = vpop.f32.mrf.mxu1 }
0x130b   :  { %v1885_v23 = vadd.f32 %v3793_v22, %v1884_v21 }
0x130c   :  { %v2943_v29 = vpop.f32.mrf.mxu1 }
0x130d   :  { %1896 = vrot.lane.b32.xlu0 %v1885_v23, %s3252_s4  ;;  %v1888_v39 = vadd.f32 %v1885_v23, %v265_v38 }
0x130f   :  { %v2579_v40 = vmul.f32 -1.442695, %v1888_v39 }
0x1316   :  { %v3098_v34 = vpop.eup %3097 }
0x1317   :  { %v1788_v53 = vadd.f32 1.0, %v3098_v34 }
0x1319   :  { %3099 = vrcp.f32 %v1788_v53 }
0x131a   :  { %3101 = vpow2.f32 %v2579_v40 }
0x131e   :  { %v1793_v24 = vpop.permute.xlu1 %1792 }
0x1326   :  { %v3100_v31 = vpop.eup %3099 }
0x1327   :  { %v1795_v37 = vmul.f32 %v3100_v31, %v1793_v24  ;;  %v3102_v41 = vpop.eup %3101 }
0x1328   :  { %v1892_v48 = vadd.f32 1.0, %v3102_v41 }
0x1329   :  { %1797 = vrot.lane.b32.xlu1 %v1795_v37, %s3252_s4 }
0x132a   :  { %3103 = vrcp.f32 %v1892_v48 }
0x1337   :  { %v3104_v49 = vpop.eup %3103 }
0x137f   :  { %v1897_v50 = vpop.permute.xlu0 %1896 }
0x1380   :  { %v1899_v51 = vmul.f32 %v3104_v49, %v1897_v50 }
0x1382   :  { %1901 = vrot.lane.b32.xlu0 %v1899_v51, %s3252_s4 }
0x139b   :  { %v1798_v52 = vpop.permute.xlu1 %1797 }
0x139c   :  { %v1800_v55 = vadd.f32 %v1798_v52, %v1709_v32  ;;  %v123_v52 = vld [vmem:[%s3965_s9 + $0x18] sm:$0xff] }
0x139e   :  { %3105 = vtanh.f32 %v1800_v55 }
0x13ab   :  { %v3106_v56 = vpop.eup %3105 }
0x13ac   :  { %v1802_v57 = vsub.f32 %v3748_v43, %v3106_v56  ;;  %v3865_v43 = vld [vmem:[#allocation10] ss:$0 sm:$0xff] }
0x13ae   :  { %1804 = vrot.lane.b32.xlu1 %v1802_v57, %s3254_s0 }
0x13f4   :  { %v1902_v47 = vpop.permute.xlu0 %1901 }
0x13f5   :  { %v1904_v58 = vadd.f32 %v1902_v47, %v265_v38 }
0x13f7   :  { %3107 = vtanh.f32 %v1904_v58 }
0x1404   :  { %v3108_v59 = vpop.eup %3107 }
0x1405   :  { %v1906_v60 = vsub.f32 %v3752_v16, %v3108_v59 }
0x1407   :  { %1908 = vrot.lane.b32.xlu0 %v1906_v60, %s3254_s0  ;;  %v122_v60 = vld [vmem:[%s3965_s9 + $0x10] sm:$0xff] }
0x1420   :  { %v1805_v61 = vpop.permute.xlu1 %1804 }
0x1421   :  { %v1807_v62 = vmul.f32 %v3100_v31, %v1805_v61  ;;  %v2378_v61 = vld [vmem:[#allocation2] sm:$0xff] }
0x1423   :  { %1809 = vrot.lane.b32.xlu1 %v1807_v62, %s3256_s23  ;;  %v121_v62 = vld [vmem:[%s3965_s9 + $0x8] sm:$0xff] }
0x1479   :  { %v1909_v63 = vpop.permute.xlu0 %1908 }
0x147a   :  { %v1911_v4 = vmul.f32 %v3104_v49, %v1909_v63  ;;  %v120_v63 = vld [vmem:[%s3965_s9] sm:$0xff] }
0x147c   :  { %1913 = vrot.lane.b32.xlu0 %v1911_v4, %s3256_s23  ;;  %v2379_v4 = vld [vmem:[#allocation2 + $0x8] sm:$0xff] }
0x1495   :  { %v1810_v0 = vpop.permute.xlu1 %1809 }
0x1496   :  { %v3809_v1 = vadd.f32 %v3106_v56, %v1810_v0  ;;  %v2380_v0 = vld [vmem:[#allocation2 + $0x10] sm:$0xff] }
0x1498   :  { %1814 = vrot.lane.b32.xlu1 %v3809_v1, %s3252_s4 }
0x14ee   :  { %v1914_v2 = vpop.permute.xlu0 %1913 }
0x14ef   :  { %v3813_v3 = vadd.f32 %v3108_v59, %v1914_v2  ;;  %v2382_v2 = vld [vmem:[#allocation2 + $0x20] sm:$0xff] }
0x14f1   :  { %1918 = vrot.lane.b32.xlu0 %v3813_v3, %s3252_s4 }
0x150a   :  { %v1815_v5 = vpop.permute.xlu1 %1814 }
0x150b   :  { %1817 = vst.msk [vmem:[#allocation2 + $0x28] sm:$0xff] %vm311_vm3, %v1815_v5  ;;  %2964 = vmatmul.mubr.msk.f32.vlgmr.msra.gmra.mxu1 %vm311_vm3, %v1815_v5 }
0x150c   :  { %2978 = vmatpush3.msra.mxu1 %v3129_v6  ;;  %2985 = vmatprep.mubr.msk.f32.mxu1 %vm3255_vm2, %v3253_v25 }
0x150d   :  { %2979 = vmatprep.subr.mxu1 %v3253_v25 }
0x150e   :  { %2980 = vmatpush3.msra.mxu1 %v3130_v10 }
0x150f   :  { %2981 = vmatprep.subr.mxu1 %v3253_v25 }
0x1510   :  { %2982 = vmatpush3.msra.mxu1 %v3131_v44 }
0x1511   :  { %2983 = vmatprep.subr.mxu1 %v3253_v25 }
0x1512   :  { %2984 = vmatpush3.msra.mxu1 %v3132_v7 }
0x1513   :  { %2999 = vmatprep.subr.mxu1 %v123_v52 }
0x1563   :  { %v1919_v8 = vpop.permute.xlu0 %1918 }
0x1564   :  { %2953 = vmatmul.mubr.msk.f32.vlgmr.msra.gmra.mxu0 %vm311_vm3, %v1919_v8 }
0x1565   :  { %2967 = vmatpush3.msra.mxu0 %v3133_v9  ;;  %2974 = vmatprep.mubr.msk.f32.mxu0 %vm3255_vm2, %v3253_v25 }
0x1566   :  { %2968 = vmatprep.subr.mxu0 %v3253_v25 }
0x1567   :  { %2969 = vmatpush3.msra.mxu0 %v3134_v45 }
0x1568   :  { %2970 = vmatprep.subr.mxu0 %v3253_v25 }
0x1569   :  { %2971 = vmatpush3.msra.mxu0 %v3135_v11 }
0x156a   :  { %2972 = vmatprep.subr.mxu0 %v3253_v25 }
0x156b   :  { %2973 = vmatpush3.msra.mxu0 %v3136_v42  ;;  %v2588_v42 = vld [vmem:[%s3966_s10] ss:$0 sm:$0xff] }
0x156c   :  { %2975 = vmatmul.mubr.msk.f32.vlgmr.msra.gmra.mxu0 %vm311_vm3, %v1919_v8  ;;  %2988 = vmatprep.subr.mxu0 %v3253_v25 }
0x156d   :  { %2989 = vmatpush3.msra.mxu0 %v3500_v13  ;;  %2996 = vmatprep.mubr.msk.f32.mxu0 %vm3255_vm2, %v3253_v25 }
0x156e   :  { %2990 = vmatprep.subr.mxu0 %v3253_v25 }
0x156f   :  { %2991 = vmatpush3.msra.mxu0 %v3502_v14 }
0x1570   :  { %2992 = vmatprep.subr.mxu0 %v3253_v25 }
0x1571   :  { %2993 = vmatpush3.msra.mxu0 %v3510_v17 }
0x1572   :  { %2994 = vmatprep.subr.mxu0 %v3253_v25 }
0x1573   :  { %2995 = vmatpush3.msra.mxu0 %v3513_v18 }
0x15cb   :  { %v2060_v12 = vpop.f32.mrf.mxu1 }
0x15cc   :  { %v2061_v13 = vadd.f32 %v3865_v43, %v2060_v12 }
0x15cd   :  { %v2965_v15 = vpop.f32.mrf.mxu1 }
0x15ce   :  { %2072 = vrot.lane.b32.xlu1 %v2061_v13, %s3252_s4 }
0x1624   :  { %v1988_v16 = vpop.f32.mrf.mxu0 }
0x1625   :  { %v1989_v14 = vadd.f32 %v3869_v19, %v1988_v16 }
0x1626   :  { %v2954_v20 = vpop.f32.mrf.mxu0 }
0x1627   :  { %v2064_v26 = vadd.f32 %v2061_v13, %v1989_v14 }
0x1629   :  { %v2582_v17 = vmul.f32 -1.442695, %v2064_v26 }
0x162b   :  { %3109 = vpow2.f32 %v2582_v17 }
0x162c   :  { %v2164_v25 = vpop.f32.mrf.mxu0 }
0x162d   :  { %v2165_v18 = vadd.f32 %v3793_v22, %v2164_v25 }
0x162e   :  { %v2976_v27 = vpop.f32.mrf.mxu0 }
0x162f   :  { %2176 = vrot.lane.b32.xlu0 %v2165_v18, %s3252_s4  ;;  %v2168_v21 = vadd.f32 %v2165_v18, %v270_v36 }
0x1631   :  { %v2584_v23 = vmul.f32 -1.442695, %v2168_v21 }
0x1638   :  { %v3110_v28 = vpop.eup %3109 }
0x1639   :  { %v2068_v30 = vadd.f32 1.0, %v3110_v28 }
0x163b   :  { %3111 = vrcp.f32 %v2068_v30 }
0x163c   :  { %3113 = vpow2.f32 %v2584_v23 }
0x1640   :  { %v2073_v33 = vpop.permute.xlu1 %2072 }
0x1648   :  { %v3112_v32 = vpop.eup %3111 }
0x1649   :  { %v2075_v35 = vmul.f32 %v3112_v32, %v2073_v33  ;;  %v3114_v29 = vpop.eup %3113 }
0x164a   :  { %v2172_v34 = vadd.f32 1.0, %v3114_v29 }
0x164b   :  { %2077 = vrot.lane.b32.xlu1 %v2075_v35, %s3252_s4 }
0x164c   :  { %3115 = vrcp.f32 %v2172_v34 }
0x1659   :  { %v3116_v22 = vpop.eup %3115 }
0x16a1   :  { %v2177_v53 = vpop.permute.xlu0 %2176 }
0x16a2   :  { %v2179_v31 = vmul.f32 %v3116_v22, %v2177_v53 }
0x16a4   :  { %2181 = vrot.lane.b32.xlu0 %v2179_v31, %s3252_s4 }
0x16bd   :  { %v2078_v24 = vpop.permute.xlu1 %2077 }
0x16be   :  { %v2080_v37 = vadd.f32 %v2078_v24, %v1989_v14 }
0x16c0   :  { %3117 = vtanh.f32 %v2080_v37 }
0x16cd   :  { %v3118_v38 = vpop.eup %3117 }
0x16ce   :  { %v2082_v39 = vsub.f32 %v3809_v1, %v3118_v38  ;;  %v2381_v1 = vld [vmem:[#allocation2 + $0x18] sm:$0xff] }
0x16d0   :  { %2084 = vrot.lane.b32.xlu1 %v2082_v39, %s3254_s0 }
0x1716   :  { %v2182_v46 = vpop.permute.xlu0 %2181 }
0x1717   :  { %v2184_v54 = vadd.f32 %v2182_v46, %v270_v36 }
0x1719   :  { %3119 = vtanh.f32 %v2184_v54 }
0x1726   :  { %v3120_v40 = vpop.eup %3119 }
0x1727   :  { %v2186_v41 = vsub.f32 %v3813_v3, %v3120_v40  ;;  %v2383_v3 = vld [vmem:[#allocation2 + $0x28] sm:$0xff] }
0x1729   :  { %2188 = vrot.lane.b32.xlu0 %v2186_v41, %s3254_s0 }
0x1742   :  { %v2085_v48 = vpop.permute.xlu1 %2084 }
0x1743   :  { %v2087_v49 = vmul.f32 %v3112_v32, %v2085_v48 }
0x1745   :  { %2089 = vrot.lane.b32.xlu1 %v2087_v49, %s3256_s23 }
0x179b   :  { %v2189_v50 = vpop.permute.xlu0 %2188 }
0x179c   :  { %v2191_v51 = vmul.f32 %v3116_v22, %v2189_v50 }
0x179e   :  { %2193 = vrot.lane.b32.xlu0 %v2191_v51, %s3256_s23 }
0x17b7   :  { %v2090_v55 = vpop.permute.xlu1 %2089 }
0x17b8   :  { %v3887_v56 = vadd.f32 %v3118_v38, %v2090_v55 }
0x17ba   :  { %2094 = vrot.lane.b32.xlu1 %v3887_v56, %s3252_s4 }
0x1810   :  { %v2194_v57 = vpop.permute.xlu0 %2193 }
0x1811   :  { %v2196_v47 = vadd.f32 %v3120_v40, %v2194_v57 }
0x1813   :  { %2198 = vrot.lane.b32.xlu0 %v2196_v47, %s3252_s4 }
0x182c   :  { %v2095_v58 = vpop.permute.xlu1 %2094 }
0x182d   :  { %2097 = vst.msk [vmem:[#allocation2 + $0x30] sm:$0xff] %vm311_vm3, %v2095_v58  ;;  %2997 = vmatmul.mubr.msk.f32.vlgmr.msra.gmra.mxu0 %vm311_vm3, %v2095_v58 }
0x1834   :  { %v2384_v5 = vld [vmem:[#allocation2 + $0x30] sm:$0xff] }
0x1885   :  { %v2199_v59 = vpop.permute.xlu0 %2198 }
0x1886   :  { %2986 = vmatmul.mubr.msk.f32.vlgmr.msra.gmra.mxu1 %vm311_vm3, %v2199_v59 }
0x1887   :  { %3000 = vmatpush3.msra.mxu1 %v123_v52  ;;  %3007 = vmatprep.mubr.msk.f32.mxu1 %vm311_vm3, %v2378_v61 }
0x1888   :  { %3001 = vmatprep.subr.mxu1 %v122_v60 }
0x1889   :  { %3002 = vmatpush3.msra.mxu1 %v122_v60 }
0x188a   :  { %3003 = vmatprep.subr.mxu1 %v121_v62 }
0x188b   :  { %3004 = vmatpush3.msra.mxu1 %v121_v62 }
0x188c   :  { %3005 = vmatprep.subr.mxu1 %v120_v63 }
0x188d   :  { %3006 = vmatpush3.msra.mxu1 %v120_v63 }
0x188e   :  { %3008 = vmatmul.mubr.msk.f32.vlgmr.msra.gmra.mxu1 %vm311_vm3, %v2379_v4 }
0x188f   :  { %3010 = vmatprep.mubr.msk.f32.mxu1 %vm311_vm3, %v2380_v0 }
0x1892   :  { %3011 = vmatmul.mubr.msk.f32.gmra.mxu1 %vm311_vm3, %v2381_v1 }
0x1893   :  { %3013 = vmatprep.mubr.msk.f32.mxu1 %vm311_vm3, %v2382_v2 }
0x1896   :  { %3014 = vmatmul.mubr.msk.f32.gmra.mxu1 %vm311_vm3, %v2383_v3 }
0x1897   :  { %3016 = vmatprep.mubr.msk.f32.mxu1 %vm311_vm3, %v2384_v5 }
0x18ed   :  { %v2340_v6 = vpop.f32.mrf.mxu0 }
0x18ee   :  { %v2341_v10 = vadd.f32 %v3865_v43, %v2340_v6 }
0x18ef   :  { %v2998_v44 = vpop.f32.mrf.mxu0 }
0x18f0   :  { %2352 = vrot.lane.b32.xlu1 %v2341_v10, %s3252_s4 }
0x1946   :  { %v2268_v7 = vpop.f32.mrf.mxu1 }
0x1947   :  { %v2269_v8 = vadd.f32 %v3869_v19, %v2268_v7 }
0x1948   :  { %v2987_v9 = vpop.f32.mrf.mxu1 }
0x1949   :  { %v2344_v45 = vadd.f32 %v2341_v10, %v2269_v8 }
0x194b   :  { %v2587_v11 = vmul.f32 -1.442695, %v2344_v45 }
0x194d   :  { %3121 = vpow2.f32 %v2587_v11 }
0x194e   :  { %v3009_v12 = vpop.f32.mrf.mxu1 }
0x194f   :  { %v2488_v13 = vadd.f32 %v3009_v12, %v2588_v42 }
0x1950   :  { %v2482_v15 = vpop.f32.mrf.mxu1 }
0x1951   :  { %2523 = vst.msk [vmem:[%s3967_s11 + $0x8] sm:$0xff] %vm2521_vm4, %v2488_v13  ;;  %v2483_v43 = vadd.f32 %v2588_v42, %v2482_v15 }
0x1952   :  { %v3012_v16 = vpop.f32.mrf.mxu1 }
0x1953   :  { %2522 = vst.msk [vmem:[%s3967_s11] sm:$0xff] %vm2521_vm4, %v2483_v43  ;;  %v2498_v19 = vadd.f32 %v3012_v16, %v2588_v42 }
0x1954   :  { %v2492_v14 = vpop.f32.mrf.mxu1 }
0x1955   :  { %2525 = vst.msk [vmem:[%s3967_s11 + $0x18] sm:$0xff] %vm2521_vm4, %v2498_v19  ;;  %v2493_v20 = vadd.f32 %v2588_v42, %v2492_v14 }
0x1956   :  { %v3015_v26 = vpop.f32.mrf.mxu1 }
0x1957   :  { %2524 = vst.msk [vmem:[%s3967_s11 + $0x10] sm:$0xff] %vm2521_vm4, %v2493_v20  ;;  %v2508_v17 = vadd.f32 %v3015_v26, %v2588_v42 }
0x1958   :  { %v2502_v25 = vpop.f32.mrf.mxu1 }
0x1959   :  { %2527 = vst.msk [vmem:[%s3967_s11 + $0x28] sm:$0xff] %vm2521_vm4, %v2508_v17  ;;  %v2503_v18 = vadd.f32 %v2588_v42, %v2502_v25 }
0x195a   :  { %v3122_v27 = vpop.eup %3121 }
0x195b   :  { %v2348_v28 = vadd.f32 1.0, %v3122_v27  ;;  %2526 = vst.msk [vmem:[%s3967_s11 + $0x20] sm:$0xff] %vm2521_vm4, %v2503_v18 }
0x195d   :  { %3123 = vrcp.f32 %v2348_v28 }
0x1962   :  { %v2353_v32 = vpop.permute.xlu1 %2352 }
0x196a   :  { %v3124_v30 = vpop.eup %3123 }
0x196b   :  { %v2355_v33 = vmul.f32 %v3124_v30, %v2353_v32 }
0x196d   :  { %2357 = vrot.lane.b32.xlu0 %v2355_v33, %s3252_s4 }
0x19df   :  { %v2358_v35 = vpop.permute.xlu0 %2357 }
0x19e0   :  { %v2360_v36 = vadd.f32 %v2358_v35, %v2269_v8 }
0x19e2   :  { %3125 = vtanh.f32 %v2360_v36 }
0x19ef   :  { %v3126_v21 = vpop.eup %3125 }
0x19f0   :  { %v2362_v23 = vsub.f32 %v3887_v56, %v3126_v21 }
0x19f2   :  { %2364 = vrot.lane.b32.xlu1 %v2362_v23, %s3254_s0 }
0x1a64   :  { %v2365_v29 = vpop.permute.xlu1 %2364 }
0x1a65   :  { %v2367_v34 = vmul.f32 %v3124_v30, %v2365_v29 }
0x1a67   :  { %2369 = vrot.lane.b32.xlu0 %v2367_v34, %s3256_s23 }
0x1ad9   :  { %v2370_v22 = vpop.permute.xlu0 %2369 }
0x1ada   :  { %v2372_v53 = vadd.f32 %v3126_v21, %v2370_v22 }
0x1adc   :  { %2374 = vrot.lane.b32.xlu1 %v2372_v53, %s3252_s4 }
0x1b4e   :  { %v2375_v31 = vpop.permute.xlu1 %2374 }
0x1b4f   :  { %2377 = vst.msk [vmem:[#allocation2 + $0x38] sm:$0xff] %vm311_vm3, %v2375_v31 }
0x1b56   :  { %v2385_v24 = vld [vmem:[#allocation2 + $0x38] sm:$0xff] }
0x1b57   :  { %3017 = vmatmul.mubr.msk.f32.gmra.mxu1 %vm311_vm3, %v2385_v24 }
0x1c17   :  { %v3018_v37 = vpop.f32.mrf.mxu1 }
0x1c18   :  { %v2518_v38 = vadd.f32 %v3018_v37, %v2588_v42 }
0x1c19   :  { %v2512_v39 = vpop.f32.mrf.mxu1 }
0x1c1a   :  { %2529 = vst.msk [vmem:[%s3967_s11 + $0x38] sm:$0xff] %vm2521_vm4, %v2518_v38  ;;  %v2513_v46 = vadd.f32 %v2588_v42, %v2512_v39 }
0x1c1c   :  { %2528 = vst.msk [vmem:[%s3967_s11 + $0x30] sm:$0xff] %vm2521_vm4, %v2513_v46 }
0x1c1d   :  { %2534 = vsyncpa [#allocation4], 1 }
0x1c1e   :  { %2535 = vsyncpa [#allocation6], 1 }
0x1c1f   :  { %2536 = vsyncpa [#allocation9], 1 }

</bundles_post_ra>
